<compile_context>
chip_gen: v5e
topology: v5e:2x2
jax: 0.10.0
libtpu: 0.0.40
codegen_flags: <defaults>
</compile_context>

<pallas_src>
import functools

import numpy as np
import jax
import jax.numpy as jnp
from jax.experimental import pallas as pl
from jax.experimental.pallas import tpu as pltpu


# ----------------------------------------------------------------------------
# Fused Pallas kernel.
#   query-side inputs : (TQ, feat)   — feature axis on lanes
#   target-side inputs: (feat, TPAD) — unified padded target axis on lanes
#   output            : (TQ, 2*TPAD + 128) — [cost | min_iou | is_prob] slab
# ----------------------------------------------------------------------------
def _fused_cost_kernel(obj_logits_ref, verb_logits_ref, sub_boxes_ref, obj_boxes_ref,
                       is_logits_ref, onehot_t_ref, verb_rhs_ref, tgt_pack_ref,
                       out_ref, *, w_obj, w_verb, w_bbox, w_giou, tpad):
    pack = tgt_pack_ref[...]                      # (24, TPAD) precomputed target data
    pos_den_inv = pack[0:1, :]                    # 1 / (sum tvp + 1e-4)
    neg_den_inv = pack[1:2, :]                    # 1 / (sum neg_t + 1e-4)
    neg_colsum = pack[2:3, :]                     # sum_Cv neg_t
    seen_col = pack[3:4, :]                       # 1.0 on seen target columns
    any_nz = pack[4:5, :]                         # target obj box has any nonzero coord
    all_zero = pack[5:6, :]                       # 1 - any_nz
    area_sub_t = pack[6:7, :]                     # target sub-box area (from xyxy)
    area_obj_t = pack[7:8, :]                     # target obj-box area (from xyxy)
    tsub = pack[8:16, :]                          # rows: cx,cy,w,h,x1,y1,x2,y2
    tobj = pack[16:24, :]

    # ---- object-class cost: -softmax(logits) @ onehot (single MXU matmul, all targets)
    ol = obj_logits_ref[...]
    e = jnp.exp(ol - jnp.max(ol, axis=-1, keepdims=True))
    obj_prob = e * pl.reciprocal(jnp.sum(e, axis=-1, keepdims=True), approx=True)
    cost_obj_class = -jnp.dot(obj_prob, onehot_t_ref[...],
                              preferred_element_type=jnp.float32)          # (TQ, TPAD)

    # ---- verb-class cost: ONE matmul against [tvp | neg_t]; (1-p)@neg_t recovered
    # as colsum(neg_t) - p@neg_t.
    vp = pl.reciprocal(1.0 + jnp.exp(-verb_logits_ref[...]), approx=True)  # sigmoid
    vm = jnp.dot(vp, verb_rhs_ref[...], preferred_element_type=jnp.float32)  # (TQ, 2*TPAD)
    pos = vm[:, 0:tpad]
    neg = neg_colsum - vm[:, tpad:2 * tpad]
    cost_verb_class = -(pos * pos_den_inv + neg * neg_den_inv) * 0.5

    # ---- box costs
    def qcols(b):                                  # (TQ,4) cxcywh -> columns + xyxy + area
        cx, cy, w, h = b[:, 0:1], b[:, 1:2], b[:, 2:3], b[:, 3:4]
        x1 = cx - 0.5 * w
        y1 = cy - 0.5 * h
        x2 = cx + 0.5 * w
        y2 = cy + 0.5 * h
        return (cx, cy, w, h, x1, y1, x2, y2, (x2 - x1) * (y2 - y1))

    qs = qcols(sub_boxes_ref[...])
    qo = qcols(obj_boxes_ref[...])

    def l1(q, t):                                  # pairwise cdist(p=1) on cxcywh
        return (jnp.abs(q[0] - t[0:1, :]) + jnp.abs(q[1] - t[1:2, :]) +
                jnp.abs(q[2] - t[2:3, :]) + jnp.abs(q[3] - t[3:4, :]))

    def iou_giou(q, t, at):                        # pairwise IoU / GIoU (xyxy)
        qx1, qy1, qx2, qy2, aq = q[4], q[5], q[6], q[7], q[8]
        tx1, ty1, tx2, ty2 = t[4:5, :], t[5:6, :], t[6:7, :], t[7:8, :]
        iw = jnp.maximum(jnp.minimum(qx2, tx2) - jnp.maximum(qx1, tx1), 0.0)
        ih = jnp.maximum(jnp.minimum(qy2, ty2) - jnp.maximum(qy1, ty1), 0.0)
        inter = iw * ih
        union = aq + at - inter
        iou = inter * pl.reciprocal(union, approx=True)
        ew = jnp.maximum(qx2, tx2) - jnp.minimum(qx1, tx1)
        eh = jnp.maximum(qy2, ty2) - jnp.minimum(qy1, ty1)
        earea = ew * eh
        giou = iou - (earea - union) * pl.reciprocal(earea, approx=True)
        return iou, giou

    cost_bbox = jnp.maximum(l1(qs, tsub), l1(qo, tobj) * any_nz)
    iou_sub, giou_sub = iou_giou(qs, tsub, area_sub_t)
    iou_obj, giou_obj = iou_giou(qo, tobj, area_obj_t)
    cost_sub_giou = -giou_sub
    cost_obj_giou = -giou_obj + cost_sub_giou * all_zero
    cost_giou = jnp.maximum(cost_sub_giou, cost_obj_giou)

    # seen columns get the verb term; unseen columns use the base cost only.
    c = (w_obj * cost_obj_class + w_bbox * cost_bbox + w_giou * cost_giou +
         (w_verb * seen_col) * cost_verb_class)
    # TODO(synk): use_matching branch (pred_matching_logits) not exercised; would add a
    # third one-hot matmul term on the seen columns.

    # "interestingness" probability = softmax(is_logits)[:, 1]
    il = is_logits_ref[...]
    ie = jnp.exp(il - jnp.max(il, axis=-1, keepdims=True))
    isp = ie[:, 1:2] * pl.reciprocal(jnp.sum(ie, axis=-1, keepdims=True), approx=True)

    # single lane-dense output slab (all three sections 128-aligned -> unmasked stores)
    out_ref[:, 0:tpad] = c
    out_ref[:, tpad:2 * tpad] = jnp.minimum(iou_sub, iou_obj)
    out_ref[:, 2 * tpad:2 * tpad + 128] = jnp.broadcast_to(isp, (isp.shape[0], 128))


# ----------------------------------------------------------------------------
# Jitted device-side glue: flatten/pad queries, run the single fused pallas_call.
# ----------------------------------------------------------------------------
@functools.partial(jax.jit, static_argnames=("w_obj", "w_verb", "w_bbox", "w_giou",
                                             "tpad", "block_q"))
def _fused_costs_device(obj_logits, verb_logits, sub_boxes, obj_boxes, is_logits,
                        onehot_t, verb_rhs, tgt_pack, *,
                        w_obj, w_verb, w_bbox, w_giou, tpad, block_q):
    bs, nq = obj_logits.shape[:2]
    q = bs * nq
    q_pad = ((q + block_q - 1) // block_q) * block_q

    def prep(x):
        x = x.reshape(q, x.shape[-1]).astype(jnp.float32)
        return jnp.pad(x, ((0, q_pad - q), (0, 0)))

    ol = prep(obj_logits)
    vl = prep(verb_logits)
    sb = prep(sub_boxes)
    ob = prep(obj_boxes)
    il = prep(is_logits)
    onehot_t = onehot_t.astype(jnp.float32)
    verb_rhs = verb_rhs.astype(jnp.float32)
    tgt_pack = tgt_pack.astype(jnp.float32)

    n_obj = ol.shape[-1]
    n_verb = vl.shape[-1]
    n_is = il.shape[-1]
    out_w = 2 * tpad + 128

    kernel = functools.partial(_fused_cost_kernel, w_obj=w_obj, w_verb=w_verb,
                               w_bbox=w_bbox, w_giou=w_giou, tpad=tpad)
    return pl.pallas_call(
        kernel,
        out_shape=jax.ShapeDtypeStruct((q_pad, out_w), jnp.float32),
        grid=(q_pad // block_q,),
        in_specs=[
            pl.BlockSpec((block_q, n_obj), lambda i: (i, 0)),
            pl.BlockSpec((block_q, n_verb), lambda i: (i, 0)),
            pl.BlockSpec((block_q, 4), lambda i: (i, 0)),
            pl.BlockSpec((block_q, 4), lambda i: (i, 0)),
            pl.BlockSpec((block_q, n_is), lambda i: (i, 0)),
            pl.BlockSpec((n_obj, tpad), lambda i: (0, 0)),
            pl.BlockSpec((n_verb, 2 * tpad), lambda i: (0, 0)),
            pl.BlockSpec((24, tpad), lambda i: (0, 0)),
        ],
        out_specs=pl.BlockSpec((block_q, out_w), lambda i: (i, 0)),
        compiler_params=pltpu.CompilerParams(
            dimension_semantics=("parallel",),
            vmem_limit_bytes=64 * 1024 * 1024),
    )(ol, vl, sb, ob, il, onehot_t, verb_rhs, tgt_pack)


# ----------------------------------------------------------------------------
# Host-side target precompute (tiny numpy; all Q-independent work hoisted here).
# ----------------------------------------------------------------------------
def _prepare_targets(targets, n_obj_cls, n_verb_cls):
    tgt_st = np.concatenate([np.asarray(t['st']) for t in targets])
    seen_idx_all = np.nonzero(tgt_st == 0)[0]
    unseen_idx_all = np.nonzero(tgt_st == 1)[0]
    Ts, Tu = len(seen_idx_all), len(unseen_idx_all)
    Tall = Ts + Tu
    tpad = max(128, ((Tall + 127) // 128) * 128)      # lane-dense target axis

    obj_labels_all = np.concatenate([np.asarray(t['obj_labels']) for t in targets])
    verb_labels_all = np.concatenate(
        [np.asarray(t['verb_labels'], dtype=np.float32) for t in targets], axis=0)
    sub_boxes_all = np.concatenate(
        [np.asarray(t['sub_boxes'], dtype=np.float32) for t in targets], axis=0)
    obj_boxes_all = np.concatenate(
        [np.asarray(t['obj_boxes'], dtype=np.float32) for t in targets], axis=0)

    all_idx = np.concatenate([seen_idx_all, unseen_idx_all]).astype(np.int64)

    onehot_t = np.zeros((n_obj_cls, tpad), np.float32)
    if Tall > 0:
        onehot_t[obj_labels_all[all_idx].astype(np.int64), np.arange(Tall)] = 1.0

    tvp = np.zeros((n_verb_cls, tpad), np.float32)
    neg_t = np.zeros((n_verb_cls, tpad), np.float32)
    seen_mask_vec = (np.asarray(targets[0]['seen_mask']) == 0).astype(np.float32).reshape(-1, 1)
    if Ts > 0:
        vl_seen = verb_labels_all[seen_idx_all].T.astype(np.float32)      # (Cv, Ts)
        tvp[:, :Ts] = vl_seen
        neg_t[:, :Ts] = (1.0 - vl_seen) * seen_mask_vec
    verb_rhs = np.concatenate([tvp, neg_t], axis=1).astype(np.float32)    # (Cv, 2*TPAD)

    pos_den_inv = 1.0 / (tvp.sum(axis=0, keepdims=True) + 1e-4)
    neg_colsum = neg_t.sum(axis=0, keepdims=True)
    neg_den_inv = 1.0 / (neg_colsum + 1e-4)
    seen_col = np.zeros((1, tpad), np.float32)
    seen_col[0, :Ts] = 1.0

    sub_u = np.zeros((tpad, 4), np.float32)
    obj_u = np.zeros((tpad, 4), np.float32)
    if Tall > 0:
        sub_u[:Tall] = sub_boxes_all[all_idx]
        obj_u[:Tall] = obj_boxes_all[all_idx]

    def _rows8(b):                                   # (TPAD,4) -> (8,TPAD) cxcywh + xyxy
        cx, cy, w, h = b[:, 0], b[:, 1], b[:, 2], b[:, 3]
        x1 = cx - 0.5 * w
        y1 = cy - 0.5 * h
        x2 = cx + 0.5 * w
        y2 = cy + 0.5 * h
        return np.stack([cx, cy, w, h, x1, y1, x2, y2], axis=0).astype(np.float32)

    tsub = _rows8(sub_u)
    tobj = _rows8(obj_u)
    area_sub_t = ((tsub[6] - tsub[4]) * (tsub[7] - tsub[5]))[None, :]
    area_obj_t = ((tobj[6] - tobj[4]) * (tobj[7] - tobj[5]))[None, :]
    any_nz = (obj_u != 0).any(axis=1).astype(np.float32)[None, :]
    all_zero = 1.0 - any_nz

    aux = np.concatenate([pos_den_inv, neg_den_inv, neg_colsum, seen_col,
                          any_nz, all_zero, area_sub_t, area_obj_t],
                         axis=0).astype(np.float32)                        # (8, TPAD)
    tgt_pack = np.concatenate([aux, tsub, tobj], axis=0).astype(np.float32)  # (24, TPAD)

    return {
        'onehot_t': onehot_t, 'verb_rhs': verb_rhs, 'tgt_pack': tgt_pack,
        'tpad': tpad, 'Ts': Ts, 'Tu': Tu,
        'sizes0': [int(np.sum(np.asarray(t['st']) == 0)) for t in targets],
        'sizes1': [int(np.sum(np.asarray(t['st']) == 1)) for t in targets],
        'seen_idxs': [np.nonzero(np.asarray(t['st']) == 0)[0] for t in targets],
        'unseen_idxs': [np.nonzero(np.asarray(t['st']) == 1)[0] for t in targets],
    }


def _compute_cost_slab(outputs, tprep, w_obj, w_verb, w_bbox, w_giou):
    bs, nq = outputs['pred_obj_logits'].shape[:2]
    Q = bs * nq
    q8 = max(8, ((Q + 7) // 8) * 8)
    # single grid step for typical matcher sizes; tile at 512 for very large Q
    block_q = q8 if q8 <= 1024 else 512
    slab = _fused_costs_device(
        outputs['pred_obj_logits'], outputs['pred_verb_logits'],
        outputs['pred_sub_boxes'], outputs['pred_obj_boxes'],
        outputs['pred_is_logits'],
        jnp.asarray(tprep['onehot_t']), jnp.asarray(tprep['verb_rhs']),
        jnp.asarray(tprep['tgt_pack']),
        w_obj=float(w_obj), w_verb=float(w_verb), w_bbox=float(w_bbox),
        w_giou=float(w_giou), tpad=int(tprep['tpad']), block_q=int(block_q))
    slab = np.asarray(jax.block_until_ready(slab))[:Q]
    tpad, Ts, Tu = tprep['tpad'], tprep['Ts'], tprep['Tu']
    C_seen = slab[:, 0:Ts].reshape(bs, nq, Ts)
    C_unseen = slab[:, Ts:Ts + Tu].reshape(bs, nq, Tu)
    min_iou = slab[:, tpad + Ts:tpad + Ts + Tu].reshape(bs, nq, Tu)
    is_prob = slab[:, 2 * tpad].reshape(bs, nq)
    return C_seen, C_unseen, min_iou, is_prob


# ----------------------------------------------------------------------------
# Host-side Hungarian assignment (Jonker–Volgenant shortest augmenting path).
# ----------------------------------------------------------------------------
def _lsa_rows_le_cols(cost):
    """Assign each row to a distinct column minimizing total cost; rows <= cols."""
    n, m = cost.shape
    INF = np.inf
    u = np.zeros(n + 1)
    v = np.zeros(m + 1)
    p = np.zeros(m + 1, dtype=np.int64)     # p[j]: row (1-based) assigned to column j
    way = np.zeros(m + 1, dtype=np.int64)
    for i in range(1, n + 1):
        p[0] = i
        j0 = 0
        minv = np.full(m + 1, INF)
        used = np.zeros(m + 1, dtype=bool)
        while True:
            used[j0] = True
            i0 = p[j0]
            cur = cost[i0 - 1, :] - u[i0] - v[1:]
            better = (cur < minv[1:]) & (~used[1:])
            minv[1:] = np.where(better, cur, minv[1:])
            way[1:][better] = j0
            masked = np.where(used[1:], INF, minv[1:])
            j1 = int(np.argmin(masked)) + 1
            delta = masked[j1 - 1]
            u[p[used]] += delta
            v[used] -= delta
            minv[~used] -= delta
            j0 = j1
            if p[j0] == 0:
                break
        while True:
            j1 = way[j0]
            p[j0] = p[j1]
            j0 = j1
            if j0 == 0:
                break
    rows = p[1:]
    cols = np.nonzero(rows != 0)[0]
    return (rows[cols] - 1).astype(np.int64), cols.astype(np.int64)


def _linear_sum_assignment(C):
    """scipy.optimize.linear_sum_assignment equivalent (returns rows sorted)."""
    C = np.asarray(C, dtype=np.float64)
    nr, nc = C.shape
    if nr == 0 or nc == 0:
        return np.zeros((0,), np.int64), np.zeros((0,), np.int64)
    if nr <= nc:
        r, c = _lsa_rows_le_cols(C)
    else:
        c, r = _lsa_rows_le_cols(C.T)
    order = np.argsort(r, kind="stable")
    return r[order], c[order]


# ----------------------------------------------------------------------------
# Full matcher (device cost slab + host sequential bookkeeping).
# ----------------------------------------------------------------------------
def hungarian_matcher_hoi_two_stage(outputs, targets, *,
                                    cost_obj_class=1.0, cost_verb_class=1.0,
                                    cost_bbox=1.0, cost_giou=1.0,
                                    cost_matching=1.0, use_matching=False,
                                    topk=3, thres=0.5):
    bs, nq = outputs['pred_obj_logits'].shape[:2]
    n_obj_cls = outputs['pred_obj_logits'].shape[-1]
    n_verb_cls = outputs['pred_verb_logits'].shape[-1]

    tprep = _prepare_targets(targets, n_obj_cls, n_verb_cls)
    C_seen_np, C_unseen_np, min_iou_np, is_prob_np = _compute_cost_slab(
        outputs, tprep, cost_obj_class, cost_verb_class, cost_bbox, cost_giou)

    sizes0, sizes1 = tprep['sizes0'], tprep['sizes1']
    split0 = np.cumsum([0] + sizes0)
    split1 = np.cumsum([0] + sizes1)

    # ---------------- stage 1: seen targets ----------------
    indices0 = [list(_linear_sum_assignment(C_seen_np[b, :, split0[b]:split0[b + 1]]))
                for b in range(bs)]
    seen_pred_idx = [i for i, _ in indices0]

    # ---------------- stage 2: unseen targets ----------------
    C2 = C_unseen_np.copy()
    for b, src_idx in enumerate(seen_pred_idx):
        C2[b, np.asarray(src_idx, dtype=np.int64), :] = 9999.0
    indices1 = [list(_linear_sum_assignment(C2[b, :, split1[b]:split1[b + 1]]))
                for b in range(bs)]

    iou_keeps = [np.argwhere(min_iou_np[b, :, split1[b]:split1[b + 1]] >= 0.5)
                 for b in range(bs)]
    seen_idxs = tprep['seen_idxs']
    unseen_idxs = tprep['unseen_idxs']

    for b in range(bs):
        i0, j0 = indices0[b]
        i1, j1 = indices1[b]
        iou_keep = iou_keeps[b]
        ind1 = (np.stack([np.asarray(i1), np.asarray(j1)], axis=1)
                if len(i1) > 0 else np.zeros((0, 2), dtype=np.int64))
        # reproduce numpy `ind in iou_keep` semantics: (iou_keep == ind).any()
        kept = [ind for ind in ind1 if bool((iou_keep == ind).any())]
        ind1 = np.asarray(kept, dtype=np.int64)
        if ind1.shape[0] > 0:
            i1, j1 = ind1[:, 0], ind1[:, 1]
        else:
            i1 = np.zeros((0,), dtype=np.int64)
            j1 = np.zeros((0,), dtype=np.int64)
        j0 = seen_idxs[b][np.asarray(j0, dtype=np.int64)]
        j1 = unseen_idxs[b][np.asarray(j1, dtype=np.int64)]
        indices0[b] = (np.asarray(i0, dtype=np.int64), np.asarray(j0, dtype=np.int64))
        indices1[b] = (np.asarray(i1, dtype=np.int64), np.asarray(j1, dtype=np.int64))

    # top-k filter on "interestingness" probability for unseen matches
    for b in range(bs):
        i, j = indices1[b]
        vals = is_prob_np[b][i]
        if i.shape[0] > topk:
            order = np.argsort(-vals, kind="stable")[:topk]
            keep = vals[order] > thres
            ind = order[keep]
        else:
            keep = vals > thres
            ind = np.arange(len(vals))[keep]
        indices1[b] = (i[ind], j[ind])

    indices = []
    for b in range(bs):
        i1, j1 = indices0[b]
        i2, j2 = indices1[b]
        indices.append((np.concatenate((i1, i2)).astype(np.int64),
                        np.concatenate((j1, j2)).astype(np.int64)))

    return {'seen_indices': indices0, 'topk_indices': indices1, 'indices': indices}


# ----------------------------------------------------------------------------
# Pure-numpy reference of the cost matrices (for the smoke-test tolerance check).
# ----------------------------------------------------------------------------
def _np_reference_costs(outputs, targets, w_obj, w_verb, w_bbox, w_giou):
    bs, nq = np.shape(outputs['pred_obj_logits'])[:2]
    Q = bs * nq
    ol = np.array(outputs['pred_obj_logits'], np.float32).reshape(Q, -1)
    vl = np.array(outputs['pred_verb_logits'], np.float32).reshape(Q, -1)
    sb = np.array(outputs['pred_sub_boxes'], np.float32).reshape(Q, 4)
    ob = np.array(outputs['pred_obj_boxes'], np.float32).reshape(Q, 4)
    il = np.array(outputs['pred_is_logits'], np.float32).reshape(Q, -1)

    def softmax(x):
        e = np.exp(x - x.max(-1, keepdims=True))
        return e / e.sum(-1, keepdims=True)

    obj_prob = softmax(ol)
    verb_prob = 1.0 / (1.0 + np.exp(-vl))
    is_prob = softmax(il)[:, 1]

    st = np.concatenate([np.asarray(t['st']) for t in targets])
    seen = np.nonzero(st == 0)[0]
    unseen = np.nonzero(st == 1)[0]
    labels = np.concatenate([np.asarray(t['obj_labels']) for t in targets])
    verbs = np.concatenate([np.asarray(t['verb_labels'], np.float32) for t in targets], 0)
    subs = np.concatenate([np.asarray(t['sub_boxes'], np.float32) for t in targets], 0)
    objs = np.concatenate([np.asarray(t['obj_boxes'], np.float32) for t in targets], 0)

    def xyxy(b):
        return np.stack([b[:, 0] - 0.5 * b[:, 2], b[:, 1] - 0.5 * b[:, 3],
                         b[:, 0] + 0.5 * b[:, 2], b[:, 1] + 0.5 * b[:, 3]], -1)

    def iou_giou(a, b):
        aa = (a[:, 2] - a[:, 0]) * (a[:, 3] - a[:, 1])
        ab = (b[:, 2] - b[:, 0]) * (b[:, 3] - b[:, 1])
        lt = np.maximum(a[:, None, :2], b[None, :, :2])
        rb = np.minimum(a[:, None, 2:], b[None, :, 2:])
        wh = np.clip(rb - lt, 0, None)
        inter = wh[..., 0] * wh[..., 1]
        union = aa[:, None] + ab[None, :] - inter
        iou = inter / union
        lt2 = np.minimum(a[:, None, :2], b[None, :, :2])
        rb2 = np.maximum(a[:, None, 2:], b[None, :, 2:])
        wh2 = np.clip(rb2 - lt2, 0, None)
        e = wh2[..., 0] * wh2[..., 1]
        return iou, iou - (e - union) / e

    def cdist1(a, b):
        return np.abs(a[:, None, :] - b[None, :, :]).sum(-1)

    def cost_block(idx, with_verb):
        lab = labels[idx].astype(np.int64)
        ts, to = subs[idx], objs[idx]
        c_obj = -obj_prob[:, lab]
        c_bbox = np.maximum(cdist1(sb, ts), cdist1(ob, to) * (to != 0).any(-1)[None, :])
        iou_s, g_s = iou_giou(xyxy(sb), xyxy(ts))
        iou_o, g_o = iou_giou(xyxy(ob), xyxy(to))
        c_sg = -g_s
        c_og = -g_o + c_sg * (to == 0).all(-1)[None, :]
        c_giou = np.maximum(c_sg, c_og)
        C = w_obj * c_obj + w_bbox * c_bbox + w_giou * c_giou
        if with_verb:
            tvp = verbs[seen].T
            smask = (np.asarray(targets[0]['seen_mask']) == 0).astype(np.float32)[:, None]
            negt = (1 - tvp) * smask
            c_verb = -(verb_prob @ tvp / (tvp.sum(0, keepdims=True) + 1e-4) +
                       (1 - verb_prob) @ negt / (negt.sum(0, keepdims=True) + 1e-4)) / 2
            C = C + w_verb * c_verb
        return C, np.minimum(iou_s, iou_o)

    C_seen, _ = cost_block(seen, True)
    C_unseen, min_iou = cost_block(unseen, False)
    return (C_seen.reshape(bs, nq, -1), C_unseen.reshape(bs, nq, -1),
            min_iou.reshape(bs, nq, -1), is_prob.reshape(bs, nq))


# ----------------------------------------------------------------------------
# Demo / smoke test.
# ----------------------------------------------------------------------------
if __name__ == "__main__":
    key = jax.random.PRNGKey(0)
    bs, nq = 2, 8
    n_obj_cls, n_verb_cls, n_is_cls = 12, 8, 2
    ks = jax.random.split(key, 12)

    outputs = {
        'pred_obj_logits': jax.random.normal(ks[0], (bs, nq, n_obj_cls), jnp.float32),
        'pred_verb_logits': jax.random.normal(ks[1], (bs, nq, n_verb_cls), jnp.float32),
        'pred_sub_boxes': jax.nn.sigmoid(jax.random.normal(ks[2], (bs, nq, 4), jnp.float32)),
        'pred_obj_boxes': jax.nn.sigmoid(jax.random.normal(ks[3], (bs, nq, 4), jnp.float32)),
        'pred_is_logits': jax.random.normal(ks[4], (bs, nq, n_is_cls), jnp.float32),
    }

    # targets: batch 0 has st=[0,0,1]; batch 1 has st=[0,1,1]
    st_per_batch = [np.array([0, 0, 1], dtype=np.int64),
                    np.array([0, 1, 1], dtype=np.int64)]
    targets = []
    for b in range(bs):
        n_t = len(st_per_batch[b])
        kb = jax.random.split(ks[5 + b], 5)
        obj_labels = np.array(jax.random.randint(kb[0], (n_t,), 0, n_obj_cls))
        verb_labels = np.array(
            (jax.random.uniform(kb[1], (n_t, n_verb_cls)) > 0.5).astype(jnp.float32))
        sub_b = np.array(jax.nn.sigmoid(jax.random.normal(kb[2], (n_t, 4), jnp.float32)))
        obj_b = np.array(jax.nn.sigmoid(jax.random.normal(kb[3], (n_t, 4), jnp.float32)))
        seen_mask = np.array(jax.random.randint(kb[4], (n_verb_cls,), 0, 2))
        targets.append({'st': st_per_batch[b], 'obj_labels': obj_labels,
                        'verb_labels': verb_labels, 'sub_boxes': sub_b,
                        'obj_boxes': obj_b, 'seen_mask': seen_mask})
    # exercise the "object box is all-zero" masking path on one seen target
    # (writable host copies -> safe in-place edit)
    targets[0]['obj_boxes'][1] = 0.0

    result = hungarian_matcher_hoi_two_stage(outputs, targets)

    # basic sanity: matched indices are in range
    for b, (i, j) in enumerate(result['indices']):
        assert i.dtype == np.int64 and j.dtype == np.int64
        assert np.all((i >= 0) & (i < nq))
        assert np.all((j >= 0) & (j < len(targets[b]['st'])))

    # numerical check of the fused kernel output against a pure-numpy reference
    tprep = _prepare_targets(targets, n_obj_cls, n_verb_cls)
    C_seen_k, C_unseen_k, min_iou_k, is_prob_k = _compute_cost_slab(
        outputs, tprep, 1.0, 1.0, 1.0, 1.0)
    C_seen_r, C_unseen_r, min_iou_r, is_prob_r = _np_reference_costs(
        outputs, targets, 1.0, 1.0, 1.0, 1.0)
    np.testing.assert_allclose(C_seen_k, C_seen_r, rtol=5e-2, atol=5e-2)
    np.testing.assert_allclose(C_unseen_k, C_unseen_r, rtol=5e-2, atol=5e-2)
    np.testing.assert_allclose(min_iou_k, min_iou_r, rtol=5e-2, atol=5e-2)
    np.testing.assert_allclose(is_prob_k, is_prob_r, rtol=5e-2, atol=5e-2)

    print("KERNEL_OK")
</pallas_src>

<mosaic_0001>
module attributes {stable_mosaic.version = 11 : i64} {
  func.func @_fused_cost_kernel(%arg0: i32, %arg1: memref<16x12xf32, #tpu.memory_space<vmem>>, %arg2: memref<16x8xf32, #tpu.memory_space<vmem>>, %arg3: memref<16x4xf32, #tpu.memory_space<vmem>>, %arg4: memref<16x4xf32, #tpu.memory_space<vmem>>, %arg5: memref<16x2xf32, #tpu.memory_space<vmem>>, %arg6: memref<12x128xf32, #tpu.memory_space<vmem>>, %arg7: memref<8x256xf32, #tpu.memory_space<vmem>>, %arg8: memref<24x128xf32, #tpu.memory_space<vmem>>, %arg9: memref<16x384xf32, #tpu.memory_space<vmem>>) attributes {dimension_semantics = [#tpu.dimension_semantics<parallel>], iteration_bounds = array<i64: 1>, scalar_prefetch = 0 : i64, scratch_operands = 0 : i64, tpu.core_type = #tpu.core_type<tc>, window_params = [{transform_indices = @transform_0, window_bounds = array<i64: 16, 12>}, {transform_indices = @transform_1, window_bounds = array<i64: 16, 8>}, {transform_indices = @transform_2, window_bounds = array<i64: 16, 4>}, {transform_indices = @transform_3, window_bounds = array<i64: 16, 4>}, {transform_indices = @transform_4, window_bounds = array<i64: 16, 2>}, {pipeline_mode = #tpu.pipeline_mode<synchronous>, transform_indices = @transform_5, window_bounds = array<i64: 12, 128>}, {pipeline_mode = #tpu.pipeline_mode<synchronous>, transform_indices = @transform_6, window_bounds = array<i64: 8, 256>}, {pipeline_mode = #tpu.pipeline_mode<synchronous>, transform_indices = @transform_7, window_bounds = array<i64: 24, 128>}, {transform_indices = @transform_8, window_bounds = array<i64: 16, 384>}]} {
    %c0 = arith.constant 0 : index
    %c0_0 = arith.constant 0 : index
    %0 = vector.load %arg8[%c0, %c0_0] : memref<24x128xf32, #tpu.memory_space<vmem>>, vector<24x128xf32>
    %1 = vector.extract_strided_slice %0 {offsets = [0, 0], sizes = [1, 128], strides = [1, 1]} : vector<24x128xf32> to vector<1x128xf32>
    %2 = vector.extract_strided_slice %0 {offsets = [1, 0], sizes = [1, 128], strides = [1, 1]} : vector<24x128xf32> to vector<1x128xf32>
    %3 = vector.extract_strided_slice %0 {offsets = [2, 0], sizes = [1, 128], strides = [1, 1]} : vector<24x128xf32> to vector<1x128xf32>
    %4 = vector.extract_strided_slice %0 {offsets = [3, 0], sizes = [1, 128], strides = [1, 1]} : vector<24x128xf32> to vector<1x128xf32>
    %5 = vector.extract_strided_slice %0 {offsets = [4, 0], sizes = [1, 128], strides = [1, 1]} : vector<24x128xf32> to vector<1x128xf32>
    %6 = vector.extract_strided_slice %0 {offsets = [5, 0], sizes = [1, 128], strides = [1, 1]} : vector<24x128xf32> to vector<1x128xf32>
    %7 = vector.extract_strided_slice %0 {offsets = [6, 0], sizes = [1, 128], strides = [1, 1]} : vector<24x128xf32> to vector<1x128xf32>
    %8 = vector.extract_strided_slice %0 {offsets = [7, 0], sizes = [1, 128], strides = [1, 1]} : vector<24x128xf32> to vector<1x128xf32>
    %9 = vector.extract_strided_slice %0 {offsets = [8, 0], sizes = [8, 128], strides = [1, 1]} : vector<24x128xf32> to vector<8x128xf32>
    %10 = vector.extract_strided_slice %0 {offsets = [16, 0], sizes = [8, 128], strides = [1, 1]} : vector<24x128xf32> to vector<8x128xf32>
    %c0_1 = arith.constant 0 : index
    %c0_2 = arith.constant 0 : index
    %11 = vector.load %arg1[%c0_1, %c0_2] : memref<16x12xf32, #tpu.memory_space<vmem>>, vector<16x12xf32>
    %cst = arith.constant dense<0xFF800000> : vector<16xf32>
    %12 = vector.multi_reduction <maximumf>, %11, %cst [1] : vector<16x12xf32> to vector<16xf32>
    %13 = vector.shape_cast %12 : vector<16xf32> to vector<16x1xf32>
    %14 = vector.broadcast %13 : vector<16x1xf32> to vector<16x12xf32>
    %15 = arith.subf %11, %14 : vector<16x12xf32>
    %16 = math.exp %15 : vector<16x12xf32>
    %cst_3 = arith.constant dense<0.000000e+00> : vector<16xf32>
    %17 = vector.multi_reduction <add>, %16, %cst_3 [1] : vector<16x12xf32> to vector<16xf32>
    %18 = vector.shape_cast %17 : vector<16xf32> to vector<16x1xf32>
    %19 = tpu.reciprocal %18 {approx = true} : vector<16x1xf32> -> vector<16x1xf32>
    %20 = vector.broadcast %19 : vector<16x1xf32> to vector<16x12xf32>
    %21 = arith.mulf %16, %20 : vector<16x12xf32>
    %c0_4 = arith.constant 0 : index
    %c0_5 = arith.constant 0 : index
    %22 = vector.load %arg6[%c0_4, %c0_5] : memref<12x128xf32, #tpu.memory_space<vmem>>, vector<12x128xf32>
    %cst_6 = arith.constant dense<0.000000e+00> : vector<16x128xf32>
    %23 = tpu.matmul %21, %22, %cst_6 {dimension_numbers = #tpu.dot_dimension_numbers<[1], [0], [0], [1], [0, 0, 1, 1], [], []>} : vector<16x12xf32>, vector<12x128xf32>, vector<16x128xf32> -> vector<16x128xf32>
    %cst_7 = arith.constant 0.000000e+00 : f32
    %24 = vector.broadcast %cst_7 : f32 to vector<16x128xf32>
    %25 = arith.subf %24, %23 : vector<16x128xf32>
    %c0_8 = arith.constant 0 : index
    %c0_9 = arith.constant 0 : index
    %26 = vector.load %arg2[%c0_8, %c0_9] : memref<16x8xf32, #tpu.memory_space<vmem>>, vector<16x8xf32>
    %cst_10 = arith.constant 0.000000e+00 : f32
    %27 = vector.broadcast %cst_10 : f32 to vector<16x8xf32>
    %28 = arith.subf %27, %26 : vector<16x8xf32>
    %29 = math.exp %28 : vector<16x8xf32>
    %cst_11 = arith.constant 1.000000e+00 : f32
    %30 = vector.broadcast %cst_11 : f32 to vector<16x8xf32>
    %31 = arith.addf %30, %29 : vector<16x8xf32>
    %32 = tpu.reciprocal %31 {approx = true} : vector<16x8xf32> -> vector<16x8xf32>
    %c0_12 = arith.constant 0 : index
    %c0_13 = arith.constant 0 : index
    %33 = vector.load %arg7[%c0_12, %c0_13] : memref<8x256xf32, #tpu.memory_space<vmem>>, vector<8x256xf32>
    %cst_14 = arith.constant dense<0.000000e+00> : vector<16x256xf32>
    %34 = tpu.matmul %32, %33, %cst_14 {dimension_numbers = #tpu.dot_dimension_numbers<[1], [0], [0], [1], [0, 0, 1, 1], [], []>} : vector<16x8xf32>, vector<8x256xf32>, vector<16x256xf32> -> vector<16x256xf32>
    %35 = vector.extract_strided_slice %34 {offsets = [0, 0], sizes = [16, 128], strides = [1, 1]} : vector<16x256xf32> to vector<16x128xf32>
    %36 = vector.extract_strided_slice %34 {offsets = [0, 128], sizes = [16, 128], strides = [1, 1]} : vector<16x256xf32> to vector<16x128xf32>
    %37 = vector.broadcast %3 : vector<1x128xf32> to vector<16x128xf32>
    %38 = arith.subf %37, %36 : vector<16x128xf32>
    %39 = vector.broadcast %1 : vector<1x128xf32> to vector<16x128xf32>
    %40 = arith.mulf %35, %39 : vector<16x128xf32>
    %41 = vector.broadcast %2 : vector<1x128xf32> to vector<16x128xf32>
    %42 = arith.mulf %38, %41 : vector<16x128xf32>
    %43 = arith.addf %40, %42 : vector<16x128xf32>
    %cst_15 = arith.constant 0.000000e+00 : f32
    %44 = vector.broadcast %cst_15 : f32 to vector<16x128xf32>
    %45 = arith.subf %44, %43 : vector<16x128xf32>
    %cst_16 = arith.constant 5.000000e-01 : f32
    %46 = vector.broadcast %cst_16 : f32 to vector<16x128xf32>
    %47 = arith.mulf %45, %46 : vector<16x128xf32>
    %c0_17 = arith.constant 0 : index
    %c0_18 = arith.constant 0 : index
    %48 = vector.load %arg3[%c0_17, %c0_18] : memref<16x4xf32, #tpu.memory_space<vmem>>, vector<16x4xf32>
    %49 = vector.extract_strided_slice %48 {offsets = [0, 0], sizes = [16, 1], strides = [1, 1]} : vector<16x4xf32> to vector<16x1xf32>
    %50 = vector.extract_strided_slice %48 {offsets = [0, 1], sizes = [16, 1], strides = [1, 1]} : vector<16x4xf32> to vector<16x1xf32>
    %51 = vector.extract_strided_slice %48 {offsets = [0, 2], sizes = [16, 1], strides = [1, 1]} : vector<16x4xf32> to vector<16x1xf32>
    %52 = vector.extract_strided_slice %48 {offsets = [0, 3], sizes = [16, 1], strides = [1, 1]} : vector<16x4xf32> to vector<16x1xf32>
    %cst_19 = arith.constant 5.000000e-01 : f32
    %53 = vector.broadcast %cst_19 : f32 to vector<16x1xf32>
    %54 = arith.mulf %53, %51 : vector<16x1xf32>
    %55 = arith.subf %49, %54 : vector<16x1xf32>
    %cst_20 = arith.constant 5.000000e-01 : f32
    %56 = vector.broadcast %cst_20 : f32 to vector<16x1xf32>
    %57 = arith.mulf %56, %52 : vector<16x1xf32>
    %58 = arith.subf %50, %57 : vector<16x1xf32>
    %cst_21 = arith.constant 5.000000e-01 : f32
    %59 = vector.broadcast %cst_21 : f32 to vector<16x1xf32>
    %60 = arith.mulf %59, %51 : vector<16x1xf32>
    %61 = arith.addf %49, %60 : vector<16x1xf32>
    %cst_22 = arith.constant 5.000000e-01 : f32
    %62 = vector.broadcast %cst_22 : f32 to vector<16x1xf32>
    %63 = arith.mulf %62, %52 : vector<16x1xf32>
    %64 = arith.addf %50, %63 : vector<16x1xf32>
    %65 = arith.subf %61, %55 : vector<16x1xf32>
    %66 = arith.subf %64, %58 : vector<16x1xf32>
    %67 = arith.mulf %65, %66 : vector<16x1xf32>
    %c0_23 = arith.constant 0 : index
    %c0_24 = arith.constant 0 : index
    %68 = vector.load %arg4[%c0_23, %c0_24] : memref<16x4xf32, #tpu.memory_space<vmem>>, vector<16x4xf32>
    %69 = vector.extract_strided_slice %68 {offsets = [0, 0], sizes = [16, 1], strides = [1, 1]} : vector<16x4xf32> to vector<16x1xf32>
    %70 = vector.extract_strided_slice %68 {offsets = [0, 1], sizes = [16, 1], strides = [1, 1]} : vector<16x4xf32> to vector<16x1xf32>
    %71 = vector.extract_strided_slice %68 {offsets = [0, 2], sizes = [16, 1], strides = [1, 1]} : vector<16x4xf32> to vector<16x1xf32>
    %72 = vector.extract_strided_slice %68 {offsets = [0, 3], sizes = [16, 1], strides = [1, 1]} : vector<16x4xf32> to vector<16x1xf32>
    %cst_25 = arith.constant 5.000000e-01 : f32
    %73 = vector.broadcast %cst_25 : f32 to vector<16x1xf32>
    %74 = arith.mulf %73, %71 : vector<16x1xf32>
    %75 = arith.subf %69, %74 : vector<16x1xf32>
    %cst_26 = arith.constant 5.000000e-01 : f32
    %76 = vector.broadcast %cst_26 : f32 to vector<16x1xf32>
    %77 = arith.mulf %76, %72 : vector<16x1xf32>
    %78 = arith.subf %70, %77 : vector<16x1xf32>
    %cst_27 = arith.constant 5.000000e-01 : f32
    %79 = vector.broadcast %cst_27 : f32 to vector<16x1xf32>
    %80 = arith.mulf %79, %71 : vector<16x1xf32>
    %81 = arith.addf %69, %80 : vector<16x1xf32>
    %cst_28 = arith.constant 5.000000e-01 : f32
    %82 = vector.broadcast %cst_28 : f32 to vector<16x1xf32>
    %83 = arith.mulf %82, %72 : vector<16x1xf32>
    %84 = arith.addf %70, %83 : vector<16x1xf32>
    %85 = arith.subf %81, %75 : vector<16x1xf32>
    %86 = arith.subf %84, %78 : vector<16x1xf32>
    %87 = arith.mulf %85, %86 : vector<16x1xf32>
    %88 = vector.extract_strided_slice %9 {offsets = [0, 0], sizes = [1, 128], strides = [1, 1]} : vector<8x128xf32> to vector<1x128xf32>
    %89 = vector.broadcast %49 : vector<16x1xf32> to vector<16x128xf32>
    %90 = vector.broadcast %88 : vector<1x128xf32> to vector<16x128xf32>
    %91 = arith.subf %89, %90 : vector<16x128xf32>
    %92 = math.absf %91 : vector<16x128xf32>
    %93 = vector.extract_strided_slice %9 {offsets = [1, 0], sizes = [1, 128], strides = [1, 1]} : vector<8x128xf32> to vector<1x128xf32>
    %94 = vector.broadcast %50 : vector<16x1xf32> to vector<16x128xf32>
    %95 = vector.broadcast %93 : vector<1x128xf32> to vector<16x128xf32>
    %96 = arith.subf %94, %95 : vector<16x128xf32>
    %97 = math.absf %96 : vector<16x128xf32>
    %98 = arith.addf %92, %97 : vector<16x128xf32>
    %99 = vector.extract_strided_slice %9 {offsets = [2, 0], sizes = [1, 128], strides = [1, 1]} : vector<8x128xf32> to vector<1x128xf32>
    %100 = vector.broadcast %51 : vector<16x1xf32> to vector<16x128xf32>
    %101 = vector.broadcast %99 : vector<1x128xf32> to vector<16x128xf32>
    %102 = arith.subf %100, %101 : vector<16x128xf32>
    %103 = math.absf %102 : vector<16x128xf32>
    %104 = arith.addf %98, %103 : vector<16x128xf32>
    %105 = vector.extract_strided_slice %9 {offsets = [3, 0], sizes = [1, 128], strides = [1, 1]} : vector<8x128xf32> to vector<1x128xf32>
    %106 = vector.broadcast %52 : vector<16x1xf32> to vector<16x128xf32>
    %107 = vector.broadcast %105 : vector<1x128xf32> to vector<16x128xf32>
    %108 = arith.subf %106, %107 : vector<16x128xf32>
    %109 = math.absf %108 : vector<16x128xf32>
    %110 = arith.addf %104, %109 : vector<16x128xf32>
    %111 = vector.extract_strided_slice %10 {offsets = [0, 0], sizes = [1, 128], strides = [1, 1]} : vector<8x128xf32> to vector<1x128xf32>
    %112 = vector.broadcast %69 : vector<16x1xf32> to vector<16x128xf32>
    %113 = vector.broadcast %111 : vector<1x128xf32> to vector<16x128xf32>
    %114 = arith.subf %112, %113 : vector<16x128xf32>
    %115 = math.absf %114 : vector<16x128xf32>
    %116 = vector.extract_strided_slice %10 {offsets = [1, 0], sizes = [1, 128], strides = [1, 1]} : vector<8x128xf32> to vector<1x128xf32>
    %117 = vector.broadcast %70 : vector<16x1xf32> to vector<16x128xf32>
    %118 = vector.broadcast %116 : vector<1x128xf32> to vector<16x128xf32>
    %119 = arith.subf %117, %118 : vector<16x128xf32>
    %120 = math.absf %119 : vector<16x128xf32>
    %121 = arith.addf %115, %120 : vector<16x128xf32>
    %122 = vector.extract_strided_slice %10 {offsets = [2, 0], sizes = [1, 128], strides = [1, 1]} : vector<8x128xf32> to vector<1x128xf32>
    %123 = vector.broadcast %71 : vector<16x1xf32> to vector<16x128xf32>
    %124 = vector.broadcast %122 : vector<1x128xf32> to vector<16x128xf32>
    %125 = arith.subf %123, %124 : vector<16x128xf32>
    %126 = math.absf %125 : vector<16x128xf32>
    %127 = arith.addf %121, %126 : vector<16x128xf32>
    %128 = vector.extract_strided_slice %10 {offsets = [3, 0], sizes = [1, 128], strides = [1, 1]} : vector<8x128xf32> to vector<1x128xf32>
    %129 = vector.broadcast %72 : vector<16x1xf32> to vector<16x128xf32>
    %130 = vector.broadcast %128 : vector<1x128xf32> to vector<16x128xf32>
    %131 = arith.subf %129, %130 : vector<16x128xf32>
    %132 = math.absf %131 : vector<16x128xf32>
    %133 = arith.addf %127, %132 : vector<16x128xf32>
    %134 = vector.broadcast %5 : vector<1x128xf32> to vector<16x128xf32>
    %135 = arith.mulf %133, %134 : vector<16x128xf32>
    %136 = arith.maximumf %110, %135 : vector<16x128xf32>
    %137 = vector.extract_strided_slice %9 {offsets = [4, 0], sizes = [1, 128], strides = [1, 1]} : vector<8x128xf32> to vector<1x128xf32>
    %138 = vector.extract_strided_slice %9 {offsets = [5, 0], sizes = [1, 128], strides = [1, 1]} : vector<8x128xf32> to vector<1x128xf32>
    %139 = vector.extract_strided_slice %9 {offsets = [6, 0], sizes = [1, 128], strides = [1, 1]} : vector<8x128xf32> to vector<1x128xf32>
    %140 = vector.extract_strided_slice %9 {offsets = [7, 0], sizes = [1, 128], strides = [1, 1]} : vector<8x128xf32> to vector<1x128xf32>
    %141 = vector.broadcast %61 : vector<16x1xf32> to vector<16x128xf32>
    %142 = vector.broadcast %139 : vector<1x128xf32> to vector<16x128xf32>
    %143 = arith.minimumf %141, %142 : vector<16x128xf32>
    %144 = vector.broadcast %55 : vector<16x1xf32> to vector<16x128xf32>
    %145 = vector.broadcast %137 : vector<1x128xf32> to vector<16x128xf32>
    %146 = arith.maximumf %144, %145 : vector<16x128xf32>
    %147 = arith.subf %143, %146 : vector<16x128xf32>
    %cst_29 = arith.constant 0.000000e+00 : f32
    %148 = vector.broadcast %cst_29 : f32 to vector<16x128xf32>
    %149 = arith.maximumf %147, %148 : vector<16x128xf32>
    %150 = vector.broadcast %64 : vector<16x1xf32> to vector<16x128xf32>
    %151 = vector.broadcast %140 : vector<1x128xf32> to vector<16x128xf32>
    %152 = arith.minimumf %150, %151 : vector<16x128xf32>
    %153 = vector.broadcast %58 : vector<16x1xf32> to vector<16x128xf32>
    %154 = vector.broadcast %138 : vector<1x128xf32> to vector<16x128xf32>
    %155 = arith.maximumf %153, %154 : vector<16x128xf32>
    %156 = arith.subf %152, %155 : vector<16x128xf32>
    %cst_30 = arith.constant 0.000000e+00 : f32
    %157 = vector.broadcast %cst_30 : f32 to vector<16x128xf32>
    %158 = arith.maximumf %156, %157 : vector<16x128xf32>
    %159 = arith.mulf %149, %158 : vector<16x128xf32>
    %160 = vector.broadcast %67 : vector<16x1xf32> to vector<16x128xf32>
    %161 = vector.broadcast %7 : vector<1x128xf32> to vector<16x128xf32>
    %162 = arith.addf %160, %161 : vector<16x128xf32>
    %163 = arith.subf %162, %159 : vector<16x128xf32>
    %164 = tpu.reciprocal %163 {approx = true} : vector<16x128xf32> -> vector<16x128xf32>
    %165 = arith.mulf %159, %164 : vector<16x128xf32>
    %166 = vector.broadcast %61 : vector<16x1xf32> to vector<16x128xf32>
    %167 = vector.broadcast %139 : vector<1x128xf32> to vector<16x128xf32>
    %168 = arith.maximumf %166, %167 : vector<16x128xf32>
    %169 = vector.broadcast %55 : vector<16x1xf32> to vector<16x128xf32>
    %170 = vector.broadcast %137 : vector<1x128xf32> to vector<16x128xf32>
    %171 = arith.minimumf %169, %170 : vector<16x128xf32>
    %172 = arith.subf %168, %171 : vector<16x128xf32>
    %173 = vector.broadcast %64 : vector<16x1xf32> to vector<16x128xf32>
    %174 = vector.broadcast %140 : vector<1x128xf32> to vector<16x128xf32>
    %175 = arith.maximumf %173, %174 : vector<16x128xf32>
    %176 = vector.broadcast %58 : vector<16x1xf32> to vector<16x128xf32>
    %177 = vector.broadcast %138 : vector<1x128xf32> to vector<16x128xf32>
    %178 = arith.minimumf %176, %177 : vector<16x128xf32>
    %179 = arith.subf %175, %178 : vector<16x128xf32>
    %180 = arith.mulf %172, %179 : vector<16x128xf32>
    %181 = arith.subf %180, %163 : vector<16x128xf32>
    %182 = tpu.reciprocal %180 {approx = true} : vector<16x128xf32> -> vector<16x128xf32>
    %183 = arith.mulf %181, %182 : vector<16x128xf32>
    %184 = arith.subf %165, %183 : vector<16x128xf32>
    %185 = vector.extract_strided_slice %10 {offsets = [4, 0], sizes = [1, 128], strides = [1, 1]} : vector<8x128xf32> to vector<1x128xf32>
    %186 = vector.extract_strided_slice %10 {offsets = [5, 0], sizes = [1, 128], strides = [1, 1]} : vector<8x128xf32> to vector<1x128xf32>
    %187 = vector.extract_strided_slice %10 {offsets = [6, 0], sizes = [1, 128], strides = [1, 1]} : vector<8x128xf32> to vector<1x128xf32>
    %188 = vector.extract_strided_slice %10 {offsets = [7, 0], sizes = [1, 128], strides = [1, 1]} : vector<8x128xf32> to vector<1x128xf32>
    %189 = vector.broadcast %81 : vector<16x1xf32> to vector<16x128xf32>
    %190 = vector.broadcast %187 : vector<1x128xf32> to vector<16x128xf32>
    %191 = arith.minimumf %189, %190 : vector<16x128xf32>
    %192 = vector.broadcast %75 : vector<16x1xf32> to vector<16x128xf32>
    %193 = vector.broadcast %185 : vector<1x128xf32> to vector<16x128xf32>
    %194 = arith.maximumf %192, %193 : vector<16x128xf32>
    %195 = arith.subf %191, %194 : vector<16x128xf32>
    %cst_31 = arith.constant 0.000000e+00 : f32
    %196 = vector.broadcast %cst_31 : f32 to vector<16x128xf32>
    %197 = arith.maximumf %195, %196 : vector<16x128xf32>
    %198 = vector.broadcast %84 : vector<16x1xf32> to vector<16x128xf32>
    %199 = vector.broadcast %188 : vector<1x128xf32> to vector<16x128xf32>
    %200 = arith.minimumf %198, %199 : vector<16x128xf32>
    %201 = vector.broadcast %78 : vector<16x1xf32> to vector<16x128xf32>
    %202 = vector.broadcast %186 : vector<1x128xf32> to vector<16x128xf32>
    %203 = arith.maximumf %201, %202 : vector<16x128xf32>
    %204 = arith.subf %200, %203 : vector<16x128xf32>
    %cst_32 = arith.constant 0.000000e+00 : f32
    %205 = vector.broadcast %cst_32 : f32 to vector<16x128xf32>
    %206 = arith.maximumf %204, %205 : vector<16x128xf32>
    %207 = arith.mulf %197, %206 : vector<16x128xf32>
    %208 = vector.broadcast %87 : vector<16x1xf32> to vector<16x128xf32>
    %209 = vector.broadcast %8 : vector<1x128xf32> to vector<16x128xf32>
    %210 = arith.addf %208, %209 : vector<16x128xf32>
    %211 = arith.subf %210, %207 : vector<16x128xf32>
    %212 = tpu.reciprocal %211 {approx = true} : vector<16x128xf32> -> vector<16x128xf32>
    %213 = arith.mulf %207, %212 : vector<16x128xf32>
    %214 = vector.broadcast %81 : vector<16x1xf32> to vector<16x128xf32>
    %215 = vector.broadcast %187 : vector<1x128xf32> to vector<16x128xf32>
    %216 = arith.maximumf %214, %215 : vector<16x128xf32>
    %217 = vector.broadcast %75 : vector<16x1xf32> to vector<16x128xf32>
    %218 = vector.broadcast %185 : vector<1x128xf32> to vector<16x128xf32>
    %219 = arith.minimumf %217, %218 : vector<16x128xf32>
    %220 = arith.subf %216, %219 : vector<16x128xf32>
    %221 = vector.broadcast %84 : vector<16x1xf32> to vector<16x128xf32>
    %222 = vector.broadcast %188 : vector<1x128xf32> to vector<16x128xf32>
    %223 = arith.maximumf %221, %222 : vector<16x128xf32>
    %224 = vector.broadcast %78 : vector<16x1xf32> to vector<16x128xf32>
    %225 = vector.broadcast %186 : vector<1x128xf32> to vector<16x128xf32>
    %226 = arith.minimumf %224, %225 : vector<16x128xf32>
    %227 = arith.subf %223, %226 : vector<16x128xf32>
    %228 = arith.mulf %220, %227 : vector<16x128xf32>
    %229 = arith.subf %228, %211 : vector<16x128xf32>
    %230 = tpu.reciprocal %228 {approx = true} : vector<16x128xf32> -> vector<16x128xf32>
    %231 = arith.mulf %229, %230 : vector<16x128xf32>
    %232 = arith.subf %213, %231 : vector<16x128xf32>
    %cst_33 = arith.constant 0.000000e+00 : f32
    %233 = vector.broadcast %cst_33 : f32 to vector<16x128xf32>
    %234 = arith.subf %233, %184 : vector<16x128xf32>
    %cst_34 = arith.constant 0.000000e+00 : f32
    %235 = vector.broadcast %cst_34 : f32 to vector<16x128xf32>
    %236 = arith.subf %235, %232 : vector<16x128xf32>
    %237 = vector.broadcast %6 : vector<1x128xf32> to vector<16x128xf32>
    %238 = arith.mulf %234, %237 : vector<16x128xf32>
    %239 = arith.addf %236, %238 : vector<16x128xf32>
    %240 = arith.maximumf %234, %239 : vector<16x128xf32>
    %cst_35 = arith.constant 1.000000e+00 : f32
    %241 = vector.broadcast %cst_35 : f32 to vector<16x128xf32>
    %242 = arith.mulf %241, %25 : vector<16x128xf32>
    %cst_36 = arith.constant 1.000000e+00 : f32
    %243 = vector.broadcast %cst_36 : f32 to vector<16x128xf32>
    %244 = arith.mulf %243, %136 : vector<16x128xf32>
    %245 = arith.addf %242, %244 : vector<16x128xf32>
    %cst_37 = arith.constant 1.000000e+00 : f32
    %246 = vector.broadcast %cst_37 : f32 to vector<16x128xf32>
    %247 = arith.mulf %246, %240 : vector<16x128xf32>
    %248 = arith.addf %245, %247 : vector<16x128xf32>
    %cst_38 = arith.constant 1.000000e+00 : f32
    %249 = vector.broadcast %cst_38 : f32 to vector<1x128xf32>
    %250 = arith.mulf %249, %4 : vector<1x128xf32>
    %251 = vector.broadcast %250 : vector<1x128xf32> to vector<16x128xf32>
    %252 = arith.mulf %251, %47 : vector<16x128xf32>
    %253 = arith.addf %248, %252 : vector<16x128xf32>
    %c0_39 = arith.constant 0 : index
    %c0_40 = arith.constant 0 : index
    %254 = vector.load %arg5[%c0_39, %c0_40] : memref<16x2xf32, #tpu.memory_space<vmem>>, vector<16x2xf32>
    %cst_41 = arith.constant dense<0xFF800000> : vector<16xf32>
    %255 = vector.multi_reduction <maximumf>, %254, %cst_41 [1] : vector<16x2xf32> to vector<16xf32>
    %256 = vector.shape_cast %255 : vector<16xf32> to vector<16x1xf32>
    %257 = vector.broadcast %256 : vector<16x1xf32> to vector<16x2xf32>
    %258 = arith.subf %254, %257 : vector<16x2xf32>
    %259 = math.exp %258 : vector<16x2xf32>
    %260 = vector.extract_strided_slice %259 {offsets = [0, 1], sizes = [16, 1], strides = [1, 1]} : vector<16x2xf32> to vector<16x1xf32>
    %cst_42 = arith.constant dense<0.000000e+00> : vector<16xf32>
    %261 = vector.multi_reduction <add>, %259, %cst_42 [1] : vector<16x2xf32> to vector<16xf32>
    %262 = vector.shape_cast %261 : vector<16xf32> to vector<16x1xf32>
    %263 = tpu.reciprocal %262 {approx = true} : vector<16x1xf32> -> vector<16x1xf32>
    %264 = arith.mulf %260, %263 : vector<16x1xf32>
    %c0_43 = arith.constant 0 : index
    %c0_44 = arith.constant 0 : index
    %265 = vector.load %arg9[%c0_43, %c0_44] : memref<16x384xf32, #tpu.memory_space<vmem>>, vector<16x128xf32>
    tpu.vector_store %arg9[%c0_43, %c0_44], %253 {strides = array<i32>} : memref<16x384xf32, #tpu.memory_space<vmem>>, vector<16x128xf32>,
    %266 = arith.minimumf %165, %213 : vector<16x128xf32>
    %c0_45 = arith.constant 0 : index
    %c128 = arith.constant 128 : index
    %267 = vector.load %arg9[%c0_45, %c128] : memref<16x384xf32, #tpu.memory_space<vmem>>, vector<16x128xf32>
    tpu.vector_store %arg9[%c0_45, %c128], %266 {strides = array<i32>} : memref<16x384xf32, #tpu.memory_space<vmem>>, vector<16x128xf32>,
    %268 = vector.shape_cast %264 : vector<16x1xf32> to vector<16x1xf32>
    %269 = vector.broadcast %268 : vector<16x1xf32> to vector<16x128xf32>
    %c0_46 = arith.constant 0 : index
    %c256 = arith.constant 256 : index
    %270 = vector.load %arg9[%c0_46, %c256] : memref<16x384xf32, #tpu.memory_space<vmem>>, vector<16x128xf32>
    tpu.vector_store %arg9[%c0_46, %c256], %269 {strides = array<i32>} : memref<16x384xf32, #tpu.memory_space<vmem>>, vector<16x128xf32>,
    return
  }
  func.func @transform_0(%arg0: i32) -> (i32, i32) {
    %c0_i32 = arith.constant 0 : i32
    %c0_i32_0 = arith.constant 0 : i32
    return %arg0, %c0_i32 : i32, i32
  }
  func.func @transform_1(%arg0: i32) -> (i32, i32) {
    %c0_i32 = arith.constant 0 : i32
    %c0_i32_0 = arith.constant 0 : i32
    return %arg0, %c0_i32 : i32, i32
  }
  func.func @transform_2(%arg0: i32) -> (i32, i32) {
    %c0_i32 = arith.constant 0 : i32
    %c0_i32_0 = arith.constant 0 : i32
    return %arg0, %c0_i32 : i32, i32
  }
  func.func @transform_3(%arg0: i32) -> (i32, i32) {
    %c0_i32 = arith.constant 0 : i32
    %c0_i32_0 = arith.constant 0 : i32
    return %arg0, %c0_i32 : i32, i32
  }
  func.func @transform_4(%arg0: i32) -> (i32, i32) {
    %c0_i32 = arith.constant 0 : i32
    %c0_i32_0 = arith.constant 0 : i32
    return %arg0, %c0_i32 : i32, i32
  }
  func.func @transform_5(%arg0: i32) -> (i32, i32) {
    %c0_i32 = arith.constant 0 : i32
    %c0_i32_0 = arith.constant 0 : i32
    %c0_i32_1 = arith.constant 0 : i32
    return %c0_i32, %c0_i32_0 : i32, i32
  }
  func.func @transform_6(%arg0: i32) -> (i32, i32) {
    %c0_i32 = arith.constant 0 : i32
    %c0_i32_0 = arith.constant 0 : i32
    %c0_i32_1 = arith.constant 0 : i32
    return %c0_i32, %c0_i32_0 : i32, i32
  }
  func.func @transform_7(%arg0: i32) -> (i32, i32) {
    %c0_i32 = arith.constant 0 : i32
    %c0_i32_0 = arith.constant 0 : i32
    %c0_i32_1 = arith.constant 0 : i32
    return %c0_i32, %c0_i32_0 : i32, i32
  }
  func.func @transform_8(%arg0: i32) -> (i32, i32) {
    %c0_i32 = arith.constant 0 : i32
    %c0_i32_0 = arith.constant 0 : i32
    return %arg0, %c0_i32 : i32, i32
  }
}

</mosaic_0001>

<bundles_post_ra>
// kernel: _fused_costs_device.1
= control target key start
LH: loop header
LB: loop body
LE: loop exit
PB: predicated region body
PF: predicated region fallthrough
CT: control target
= control target key end

     0   :  { %13 = vsyncpa [#allocation3], 0  ;;  %s1261_s0 = inlined_call_operand.vmem [shape: f32[16,12], index: 0, kind: input, shape index: {}]   ;;  %s1262_s1 = inlined_call_operand.vmem [shape: f32[16,8], index: 1, kind: input, shape index: {}]   ;;  %s1263_s2 = inlined_call_operand.vmem [shape: f32[16,4], index: 2, kind: input, shape index: {}]   ;;  %s1264_s3 = inlined_call_operand.vmem [shape: f32[16,4], index: 3, kind: input, shape index: {}]   ;;  %s1265_s4 = inlined_call_operand.vmem [shape: f32[16,2], index: 4, kind: input, shape index: {}]   ;;  %s1266_s5 = inlined_call_operand.hbm [shape: f32[12,128], index: 5, kind: input, shape index: {}]   ;;  %s1267_s6 = inlined_call_operand.hbm [shape: f32[8,256], index: 6, kind: input, shape index: {}]   ;;  %s1268_s7 = inlined_call_operand.vmem [shape: f32[24,128], index: 7, kind: input, shape index: {}]   ;;  %s1269_s8 = inlined_call_operand.hbm [shape: f32[16,384], index: 8, kind: output, shape index: {}]  }
   0x1   :  { %14 = vsyncpa [#allocation6], 0 }
   0x2   :  { %15 = vsyncpa [#allocation4], 0  ;;  %s30_s29 = sshll.u32 %s1266_s5, 4  ;;  %s831_s30 = smov [#allocation2]   ;;  %s31_s29 = int_to_ptr.hbm [resolvable:$true] %s30_s29 }
   0x3   :  { %s32_s9 = sshll.u32 %s831_s30, 4  ;;  %s44_s12 = sshll.u32 %s1267_s6, 4  ;;  %s33_s9 = int_to_ptr.vmem [resolvable:$true] %s32_s9  ;;  %s45_s12 = int_to_ptr.hbm [resolvable:$true] %s44_s12 }
   0x4   :  { %s832_s13 = smov 128   ;;  %s833_s14 = smov 8  }
   0x5   :  { %38 = dma.hbm_to_vmem [thread:$0]  %s31_s29, 256, %s33_s9, [#allocation3], %s832_s13, %s832_s13, %s833_s14  }
   0x6   :  { %s834_s15 = smov [#allocation5]  }
   0x7   :  { %s46_s16 = sshll.u32 %s834_s15, 4  ;;  %s47_s16 = int_to_ptr.vmem [resolvable:$true] %s46_s16 }
   0x8   :  { %49 = dma.hbm_to_vmem [thread:$0]  %s45_s12, 256, %s47_s16, [#allocation6]  }
   0x9   :  { %825 = dma.done.wait [#allocation3], 256  }
   0xa   :  { %826 = vsyncadd [#allocation3], 4294967040 }
   0xb   :  { %827 = dma.done.wait [#allocation6], 256  }
   0xc   :  { %828 = vsyncadd [#allocation6], 4294967040  ;;  %v835_v0 = vmov 0   ;;  %v836_v1 = vmov 3   ;;  %vm65_vm0 = vcmask 97280   ;;  %v899_v2 = vld [vmem:[%s1263_s2] sm:$0xff] }
   0xd   :  { %691 = vset.pattern.permute.xlu1 %v835_v0  ;;  %696 = vset.pattern.permute.xlu0 %v836_v1  ;;  %v208_v3 = vld [vmem:[%s1263_s2 + $0x8] sm:$0xff]  ;;  %v837_v4 = vmov 1   ;;  %v209_v5 = vmul.f32 0.5, %v899_v2  ;;  %v909_v6 = vld [vmem:[%s1261_s0] sm:$0xff]  ;;  %s838_s21 = smov 126   ;;  %v839_v11 = vmov 2  }
   0xe   :  { %692 = vset.pattern.permute.xlu2 %v837_v4  ;;  %270 = vperm.xlu1 %691, %v208_v3   ;;  %v66_v7 = vsel %vm65_vm0, %v909_v6, -inf  ;;  %v916_v8 = vld [vmem:[%s1261_s0 + $0x8] sm:$0xff]  ;;  %v210_v9 = vmul.f32 0.5, %v208_v3  ;;  %v924_v12 = vld [vmem:[%s1264_s3] sm:$0xff]  ;;  %vm608_vm1 = vcmask 15360   ;;  %vm96_vm2 = vcmask 1043456  }
   0xf   :  { %213 = vrot.lane.b32.xlu2 %v209_v5, %s838_s21  ;;  %67 = vmax.xlane.f32.xlu0 %v66_v7  ;;  %v69_v10 = vsel %vm65_vm0, %v916_v8, -inf  ;;  %v237_v13 = vmul.f32 0.5, %v924_v12  ;;  %v236_v14 = vld [vmem:[%s1264_s3 + $0x8] sm:$0xff]  ;;  %s840_s3 = smov 127   ;;  %vm139_vm3 = vcmask 64512   ;;  %s655_s17 = sshll.u32 %s1269_s8, 4  ;;  %s656_s17 = int_to_ptr.hbm [resolvable:$true] %s655_s17 }
  0x10   :  { %v238_v15 = vmul.f32 0.5, %v236_v14  ;;  %v983_v36 = vld [vmem:[%s1268_s7 + $0x8] sm:$0xff]  ;;  %s842_s18 = smov 384   ;;  %s843_s19 = smov 24  }
  0x11   :  { %v286_v38 = vperm.slane %v983_v36, 1  ;;  %v273_v39 = vperm.slane %v983_v36, 0  ;;  %v301_v46 = vperm.slane %v983_v36, 2  ;;  %v316_v54 = vperm.slane %v983_v36, 3 }
  0x16   :  { %693 = vset.pattern.permute.xlu1 %v839_v11 }
  0x17   :  { %294 = vperm.xlu1 %693, %v899_v2   ;;  %215 = vrot.lane.b32.xlu2 %v210_v9, %s838_s21 }
  0x18   :  { %70 = vmax.xlane.f32.xlu0 %v69_v10 }
  0x1f   :  { %695 = vset.pattern.permute.xlu1 %v836_v1  ;;  %241 = vrot.lane.b32.xlu2 %v237_v13, %s838_s21 }
  0x20   :  { %309 = vperm.xlu1 %695, %v899_v2  }
  0x27   :  { %243 = vrot.lane.b32.xlu2 %v238_v15, %s838_s21 }
  0x28   :  { %697 = vset.pattern.permute.xlu1 %v835_v0 }
  0x29   :  { %330 = vperm.xlu1 %697, %v236_v14  }
  0x2c   :  { %313 = vperm.xlu0 %696, %v208_v3  }
  0x2f   :  { %283 = vperm.xlu2 %692, %v208_v3  }
  0x31   :  { %699 = vset.pattern.permute.xlu1 %v837_v4 }
  0x32   :  { %343 = vperm.xlu1 %699, %v236_v14  }
  0x34   :  { %700 = vset.pattern.permute.xlu0 %v839_v11 }
  0x35   :  { %354 = vperm.xlu0 %700, %v924_v12  }
  0x37   :  { %694 = vset.pattern.permute.xlu2 %v839_v11 }
  0x38   :  { %298 = vperm.xlu2 %694, %v208_v3  }
  0x3a   :  { %702 = vset.pattern.permute.xlu1 %v836_v1 }
  0x3d   :  { %704 = vset.pattern.permute.xlu0 %v835_v0 }
  0x40   :  { %698 = vset.pattern.permute.xlu2 %v837_v4 }
  0x41   :  { %339 = vperm.xlu2 %698, %v924_v12  }
  0x49   :  { %701 = vset.pattern.permute.xlu2 %v839_v11 }
  0x4a   :  { %358 = vperm.xlu2 %701, %v236_v14  }
  0x52   :  { %703 = vset.pattern.permute.xlu2 %v836_v1  ;;  %v1016_v1 = vld [vmem:[%s1268_s7 + $0x10] sm:$0xff] }
  0x53   :  { %v346_v9 = vperm.slane %v1016_v1, 1 }
  0x69   :  { %v214_v16 = vpop.permute.xlu2 %213 }
  0x6a   :  { %v938_v17 = vsub.f32 %v899_v2, %v214_v16  ;;  %v941_v18 = vadd.f32 %v214_v16, %v899_v2 }
  0x6c   :  { %v945_v19 = vsub.f32 %v941_v18, %v938_v17 }
  0x6e   :  { %227 = vrot.lane.b32.xlu0 %v945_v19, %s840_s3 }
  0x71   :  { %v216_v20 = vpop.permute.xlu2 %215 }
  0x72   :  { %v948_v21 = vsub.f32 %v208_v3, %v216_v20  ;;  %v950_v22 = vadd.f32 %v216_v20, %v208_v3  ;;  %v1021_v3 = vld [vmem:[%s1265_s4] sm:$0xff] }
  0x74   :  { %v954_v23 = vsub.f32 %v950_v22, %v948_v21 }
  0x76   :  { %229 = vrot.lane.b32.xlu1 %v954_v23, %s840_s3 }
  0x79   :  { %v242_v24 = vpop.permute.xlu2 %241 }
  0x7a   :  { %v958_v25 = vsub.f32 %v924_v12, %v242_v24  ;;  %v961_v26 = vadd.f32 %v242_v24, %v924_v12 }
  0x7c   :  { %v965_v27 = vsub.f32 %v961_v26, %v958_v25 }
  0x7e   :  { %255 = vrot.lane.b32.xlu2 %v965_v27, %s840_s3 }
  0x80   :  { %v271_v37 = vpop.permute.xlu1 %270 }
  0x81   :  { %v244_v28 = vpop.permute.xlu2 %243  ;;  %v275_v42 = vsub.f32 %v271_v37, %v273_v39 }
  0x82   :  { %v968_v29 = vsub.f32 %v236_v14, %v244_v28  ;;  %v970_v30 = vadd.f32 %v244_v28, %v236_v14  ;;  %v68_v32 = vpop.xlane.xlu0 %67 }
  0x83   :  { %v72_v33 = vsub.f32 %v909_v6, %v68_v32  ;;  %v277_v45 = vand.u32 2147483647, %v275_v42  ;;  %v333_v6 = vperm.slane %v1016_v1, 0 }
  0x84   :  { %v974_v31 = vsub.f32 %v970_v30, %v968_v29 }
  0x85   :  { %v74_v34 = vmul.f32 1.442695, %v72_v33 }
  0x86   :  { %373 = vperm.xlu2 %703, %v236_v14   ;;  %257 = vrot.lane.b32.xlu0 %v974_v31, %s840_s3  ;;  %v361_v14 = vperm.slane %v1016_v1, 2 }
  0x87   :  { %713 = vpow2.f32 %v74_v34 }
  0x89   :  { %v284_v35 = vpop.permute.xlu2 %283  ;;  %v994_v49 = vpop.permute.xlu1 %294 }
  0x8a   :  { %v288_v41 = vsub.f32 %v284_v35, %v286_v38  ;;  %v376_v35 = vperm.slane %v1016_v1, 3 }
  0x8b   :  { %v71_v40 = vpop.xlane.xlu0 %70 }
  0x8c   :  { %v73_v43 = vsub.f32 %v916_v8, %v71_v40  ;;  %v290_v44 = vand.u32 2147483647, %v288_v41  ;;  %v609_v8 = vsel %vm608_vm1, %v1021_v3, -inf  ;;  %v1046_v40 = vld [vmem:[%s1268_s7] sm:$0xff] }
  0x8d   :  { %v998_v52 = vpop.eup %713 }
  0x8e   :  { %395 = vperm.xlu0 %704, %v950_v22   ;;  %705 = vset.pattern.permute.xlu2 %v835_v0  ;;  %v292_v47 = vadd.f32 %v290_v44, %v277_v45  ;;  %v76_v50 = vmul.f32 1.442695, %v73_v43  ;;  %v78_v56 = vsel %vm65_vm0, %v998_v52, 0.0  ;;  %v383_v43 = vperm.slane %v1046_v40, 4 }
  0x90   :  { %715 = vpow2.f32 %v76_v50 }
  0x92   :  { %v299_v48 = vpop.permute.xlu2 %298  ;;  %v1005_v60 = vpop.permute.xlu1 %309 }
  0x93   :  { %v303_v51 = vsub.f32 %v299_v48, %v301_v46 }
  0x95   :  { %v305_v53 = vand.u32 2147483647, %v303_v51  ;;  %v89_v51 = vld [vmem:[#allocation2 + $0x8] sm:$0xf] }
  0x96   :  { %707 = vset.pattern.permute.xlu0 %v837_v4  ;;  %v1007_v61 = vpop.eup %715  ;;  %669 = vmatpush.msk.msra.mxu0 %vm96_vm2, %v89_v51 }
  0x97   :  { %v307_v55 = vadd.f32 %v305_v53, %v292_v47  ;;  %v81_v63 = vsel %vm65_vm0, %v1007_v61, 0.0  ;;  %676 = vmatpush.msk.msra.mxu3 %vm96_vm2, %v89_v51  ;;  %v88_v53 = vld [vmem:[#allocation2] sm:$0xff] }
  0x98   :  { %115 = vmatpush.msra.mxu0 %v88_v53 }
  0x99   :  { %677 = vmatpush.msra.mxu3 %v88_v53 }
  0x9b   :  { %v331_v5 = vpop.permute.xlu1 %330  ;;  %v1024_v7 = vpop.permute.xlu2 %339 }
  0x9c   :  { %v335_v10 = vsub.f32 %v331_v5, %v333_v6 }
  0x9e   :  { %v314_v57 = vpop.permute.xlu0 %313  ;;  %v337_v13 = vand.u32 2147483647, %v335_v10 }
  0x9f   :  { %v318_v58 = vsub.f32 %v314_v57, %v316_v54 }
  0xa0   :  { %79 = vadd.xlane.f32.xlu1 %v78_v56 }
  0xa1   :  { %v320_v59 = vand.u32 2147483647, %v318_v58 }
  0xa3   :  { %v1009_v62 = vadd.f32 %v320_v59, %v307_v55 }
  0xa4   :  { %v344_v11 = vpop.permute.xlu1 %343  ;;  %v359_v20 = vpop.permute.xlu2 %358 }
  0xa5   :  { %v348_v15 = vsub.f32 %v344_v11, %v346_v9  ;;  %v363_v24 = vsub.f32 %v359_v20, %v361_v14  ;;  %v347_v20 = vsub.f32 %v1024_v7, %v346_v9 }
  0xa7   :  { %v350_v16 = vand.u32 2147483647, %v348_v15  ;;  %v365_v32 = vand.u32 2147483647, %v363_v24  ;;  %v355_v50 = vpop.permute.xlu0 %354 }
  0xa8   :  { %82 = vadd.xlane.f32.xlu1 %v81_v63 }
  0xa9   :  { %v352_v28 = vadd.f32 %v350_v16, %v337_v13 }
  0xab   :  { %v367_v33 = vadd.f32 %v365_v32, %v352_v28  ;;  %v349_v32 = vand.u32 2147483647, %v347_v20 }
  0xaf   :  { %610 = vmax.xlane.f32.xlu2 %v609_v8 }
  0xc1   :  { %369 = vperm.xlu1 %702, %v924_v12  }
  0xc7   :  { %265 = vperm.xlu2 %705, %v899_v2  }
  0xc9   :  { %706 = vset.pattern.permute.xlu1 %v835_v0 }
  0xcf   :  { %325 = vperm.xlu2 %705, %v924_v12   ;;  %v607_v12 = vld [vmem:[%s1265_s4 + $0x8] sm:$0xff] }
  0xd0   :  { %v612_v47 = vsel %vm608_vm1, %v607_v12, -inf }
  0xd7   :  { %403 = vperm.xlu2 %705, %v938_v17  }
  0xd8   :  { %v256_v34 = vpop.permute.xlu2 %255 }
  0xd9   :  { %v261_v57 = vmul.f32 %v256_v34, %v965_v27 }
  0xdf   :  { %494 = vperm.xlu2 %705, %v970_v30  }
  0xe0   :  { %v374_v37 = vpop.permute.xlu2 %373  ;;  %v228_v55 = vpop.permute.xlu0 %227 }
  0xe1   :  { %v378_v41 = vsub.f32 %v374_v37, %v376_v35  ;;  %v233_v56 = vmul.f32 %v228_v55, %v945_v19 }
  0xe3   :  { %v380_v42 = vand.u32 2147483647, %v378_v41 }
  0xe5   :  { %v382_v44 = vadd.f32 %v380_v42, %v367_v33 }
  0xe7   :  { %v1054_v45 = vmul.f32 %v383_v43, %v382_v44  ;;  %502 = vperm.xlu2 %705, %v958_v25  }
  0xe8   :  { %v230_v58 = vpop.permute.xlu1 %229 }
  0xe9   :  { %v387_v48 = vmax.f32 %v1009_v62, %v1054_v45 }
  0xeb   :  { %613 = vmax.xlane.f32.xlu1 %v612_v47 }
  0xef   :  { %708 = vset.pattern.permute.xlu2 %v837_v4 }
  0xf0   :  { %518 = vperm.xlu2 %708, %v961_v26  }
  0xf8   :  { %533 = vperm.xlu2 %708, %v968_v29  }
 0x100   :  { %710 = vset.pattern.permute.xlu2 %v835_v0 }
 0x101   :  { %448 = vperm.xlu2 %710, %v233_v56   ;;  %v234_v56 = vmul.f32 %v230_v58, %v954_v23  ;;  %v137_v23 = vld [vmem:[#allocation5] sm:$0xff] }
 0x102   :  { %161 = vmatpush.msra.mxu1 %v137_v23 }
 0x109   :  { %547 = vperm.xlu2 %710, %v261_v57  }
 0x111   :  { %712 = vset.pattern.permute.xlu2 %v837_v4 }
 0x113   :  { %v80_v59 = vpop.xlane.xlu1 %79 }
 0x114   :  { %717 = vrcp.f32 %v80_v59  ;;  %v138_v59 = vld [vmem:[#allocation5 + $0x8] sm:$0xff] }
 0x115   :  { %184 = vmatpush.msra.mxu2 %v138_v59 }
 0x11a   :  { %v718_v63 = vpop.eup %717 }
 0x11b   :  { %v83_v5 = vpop.xlane.xlu1 %82  ;;  %v86_v8 = vmul.f32 %v718_v63, %v998_v52 }
 0x11c   :  { %719 = vrcp.f32 %v83_v5 }
 0x11d   :  { %670 = vmatmul.msk.f32.vlgmr.msra.gmra.mxu0 %vm65_vm0, %v86_v8 }
 0x122   :  { %v720_v10 = vpop.eup %719  ;;  %v611_v19 = vpop.xlane.xlu2 %610 }
 0x123   :  { %v615_v11 = vsub.f32 %v1021_v3, %v611_v19  ;;  %v87_v13 = vmul.f32 %v720_v10, %v1007_v61  ;;  %v362_v3 = vsub.f32 %v355_v50, %v361_v14  ;;  %v125_v14 = vld [vmem:[%s1262_s1] sm:$0xff] }
 0x125   :  { %v617_v27 = vmul.f32 1.442695, %v615_v11  ;;  %671 = vmatmul.msk.f32.vlgmr.msra.gmra.mxu3 %vm65_vm0, %v87_v13  ;;  %v364_v33 = vand.u32 2147483647, %v362_v3 }
 0x127   :  { %721 = vpow2.f32 %v617_v27 }
 0x12a   :  { %v1072_v15 = vpop.permute.xlu2 %265 }
 0x12b   :  { %v274_v20 = vsub.f32 %v1072_v15, %v273_v39 }
 0x12d   :  { %v1074_v16 = vpop.eup %721 }
 0x12e   :  { %v621_v52 = vsel %vm608_vm1, %v1074_v16, 0.0 }
 0x12f   :  { %622 = vadd.xlane.f32.xlu1 %v621_v52 }
 0x132   :  { %v326_v61 = vpop.permute.xlu2 %325 }
 0x133   :  { %v334_v24 = vsub.f32 %v326_v61, %v333_v6  ;;  %v370_v28 = vpop.permute.xlu1 %369 }
 0x134   :  { %v377_v37 = vsub.f32 %v370_v28, %v376_v35  ;;  %v127_v35 = vsub.f32 0.0, %v125_v14  ;;  %v276_v28 = vand.u32 2147483647, %v274_v20  ;;  %v1164_v14 = vperm.slane %v1016_v1, 5 }
 0x135   :  { %v336_v34 = vand.u32 2147483647, %v334_v24  ;;  %v302_v24 = vsub.f32 %v994_v49, %v301_v46  ;;  %v555_v20 = vperm.slane %v1046_v40, 7 }
 0x136   :  { %v379_v44 = vand.u32 2147483647, %v377_v37  ;;  %v129_v50 = vmul.f32 1.442695, %v127_v35  ;;  %v1173_v35 = vperm.slane %v1016_v1, 6 }
 0x137   :  { %v351_v41 = vadd.f32 %v349_v32, %v336_v34 }
 0x139   :  { %v366_v42 = vadd.f32 %v364_v33, %v351_v41  ;;  %v317_v33 = vsub.f32 %v1005_v60, %v316_v54  ;;  %v304_v41 = vand.u32 2147483647, %v302_v24 }
 0x13a   :  { %v1110_v10 = vpop.permute.xlu2 %403 }
 0x13b   :  { %v1085_v47 = vadd.f32 %v379_v44, %v366_v42  ;;  %v319_v15 = vand.u32 2147483647, %v317_v33 }
 0x13d   :  { %v1148_v46 = vmul.f32 %v383_v43, %v1085_v47  ;;  %v1167_v43 = vperm.slane %v983_v36, 6  ;;  %v1170_v47 = vperm.slane %v983_v36, 4 }
 0x142   :  { %v1112_v19 = vpop.permute.xlu2 %494 }
 0x148   :  { %390 = vperm.xlu1 %706, %v941_v18  }
 0x150   :  { %408 = vperm.xlu1 %706, %v948_v21  }
 0x158   :  { %489 = vperm.xlu1 %706, %v961_v26  }
 0x15e   :  { %v614_v7 = vpop.xlane.xlu1 %613 }
 0x15f   :  { %v616_v9 = vsub.f32 %v607_v12, %v614_v7 }
 0x160   :  { %507 = vperm.xlu1 %706, %v968_v29   ;;  %v126_v29 = vld [vmem:[%s1262_s1 + $0x8] sm:$0xff]  ;;  %s841_s1 = smov [#allocation7]  }
 0x161   :  { %v619_v6 = vmul.f32 1.442695, %v616_v9  ;;  %v128_v12 = vsub.f32 0.0, %v126_v29  ;;  %v426_v29 = vperm.slane %v983_v36, 7  ;;  %s653_s16 = sshll.u32 %s841_s1, 4  ;;  %s654_s16 = int_to_ptr.vmem [resolvable:$true] %s653_s16 }
 0x163   :  { %723 = vpow2.f32 %v619_v6  ;;  %v131_v55 = vmul.f32 1.442695, %v128_v12  ;;  %v1161_v6 = vperm.slane %v1016_v1, 7 }
 0x164   :  { %725 = vpow2.f32 %v129_v50  ;;  %v1176_v50 = vperm.slane %v1016_v1, 4  ;;  %v412_v1 = vmax.f32 %v1110_v10, %v1170_v47 }
 0x165   :  { %727 = vpow2.f32 %v131_v55 }
 0x168   :  { %709 = vset.pattern.permute.xlu1 %v837_v4 }
 0x169   :  { %v724_v51 = vpop.eup %723  ;;  %522 = vperm.xlu1 %709, %v970_v30   ;;  %v258_v30 = vpop.permute.xlu0 %257 }
 0x16a   :  { %v624_v26 = vsel %vm608_vm1, %v724_v51, 0.0  ;;  %v726_v53 = vpop.eup %725  ;;  %v262_v5 = vmul.f32 %v258_v30, %v974_v31 }
 0x16b   :  { %625 = vadd.xlane.f32.xlu0 %v624_v26  ;;  %v133_v57 = vadd.f32 1.0, %v726_v53  ;;  %v728_v4 = vpop.eup %727  ;;  %v437_v53 = vperm.slane %v983_v36, 5 }
 0x16c   :  { %v134_v8 = vadd.f32 1.0, %v728_v4 }
 0x16d   :  { %729 = vrcp.f32 %v133_v57  ;;  %v499_v57 = vmin.f32 %v1112_v19, %v1173_v35 }
 0x16e   :  { %731 = vrcp.f32 %v134_v8 }
 0x171   :  { %711 = vset.pattern.permute.xlu1 %v835_v0  ;;  %v1116_v11 = vpop.permute.xlu0 %395 }
 0x172   :  { %453 = vperm.xlu1 %711, %v234_v56   ;;  %v400_v36 = vmin.f32 %v1116_v11, %v1167_v43  ;;  %v466_v8 = vmax.f32 %v1116_v11, %v1167_v43 }
 0x173   :  { %v730_v63 = vpop.eup %729 }
 0x174   :  { %674 = vmatmul.msk.f32.vlgmr.msra.gmra.mxu2 %vm139_vm3, %v730_v63  ;;  %v732_v58 = vpop.eup %731  ;;  %672 = vmatmul.msk.f32.vlgmr.msra.gmra.mxu1 %vm139_vm3, %v730_v63 }
 0x17a   :  { %552 = vperm.xlu1 %711, %v262_v5  }
 0x17c   :  { %675 = vmatmul.msk.f32.gmra.mxu2 %vm139_vm3, %v732_v58  ;;  %673 = vmatmul.msk.f32.gmra.mxu1 %vm139_vm3, %v732_v58  ;;  %v467_v58 = vmin.f32 %v1110_v10, %v1170_v47  ;;  %v565_v10 = vmax.f32 %v1112_v19, %v1173_v35 }
 0x17f   :  { %279 = vperm.xlu0 %707, %v899_v2  }
 0x187   :  { %419 = vperm.xlu0 %707, %v941_v18  }
 0x18f   :  { %423 = vperm.xlu0 %707, %v950_v22   ;;  %v1118_v22 = vpop.permute.xlu2 %502 }
 0x197   :  { %430 = vperm.xlu0 %707, %v938_v17   ;;  %v1122_v13 = vpop.permute.xlu2 %518 }
 0x19f   :  { %434 = vperm.xlu0 %707, %v948_v21   ;;  %v1126_v52 = vpop.permute.xlu2 %533 }
 0x1a0   :  { %v538_v55 = vmax.f32 %v1126_v52, %v1164_v14  ;;  %v573_v24 = vmin.f32 %v1126_v52, %v1164_v14 }
 0x1a2   :  { %v623_v0 = vpop.xlane.xlu1 %622 }
 0x1a3   :  { %733 = vrcp.f32 %v623_v0 }
 0x1a7   :  { %529 = vperm.xlu0 %707, %v958_v25   ;;  %v1141_v34 = vpop.permute.xlu2 %448 }
 0x1a9   :  { %v734_v31 = vpop.eup %733 }
 0x1aa   :  { %v629_v2 = vmul.f32 %v734_v31, %v1074_v16 }
 0x1ac   :  { %639 = vperm.xlu2 %712, %v629_v2  }
 0x1af   :  { %v1154_v54 = vpop.permute.xlu2 %547 }
 0x1ba   :  { %v1114_v18 = vpop.permute.xlu1 %390 }
 0x1bb   :  { %v399_v26 = vmin.f32 %v1114_v18, %v1167_v43 }
 0x1bd   :  { %v414_v59 = vsub.f32 %v399_v26, %v412_v1 }
 0x1c2   :  { %v1120_v17 = vpop.permute.xlu1 %408 }
 0x1c3   :  { %v413_v0 = vmax.f32 %v1120_v17, %v1170_v47  ;;  %v468_v33 = vmin.f32 %v1120_v17, %v1170_v47 }
 0x1c5   :  { %v415_v19 = vsub.f32 %v400_v36, %v413_v0 }
 0x1ca   :  { %v1124_v25 = vpop.permute.xlu1 %489 }
 0x1d2   :  { %v1131_v3 = vpop.permute.xlu1 %507 }
 0x1d3   :  { %v512_v56 = vmax.f32 %v1131_v3, %v1176_v50  ;;  %v567_v11 = vmin.f32 %v1131_v3, %v1176_v50  ;;  %v511_v3 = vmax.f32 %v1118_v22, %v1176_v50 }
 0x1d5   :  { %v514_v23 = vsub.f32 %v499_v57, %v512_v56  ;;  %v569_v52 = vsub.f32 %v565_v10, %v567_v11  ;;  %v195_v10 = vperm.slane %v1046_v40, 0 }
 0x1db   :  { %v523_v42 = vpop.permute.xlu1 %522 }
 0x1dc   :  { %v571_v31 = vmax.f32 %v523_v42, %v1161_v6 }
 0x1de   :  { %v626_v21 = vpop.xlane.xlu0 %625 }
 0x1df   :  { %735 = vrcp.f32 %v626_v21 }
 0x1e4   :  { %v1158_v9 = vpop.permute.xlu1 %453 }
 0x1e5   :  { %v736_v27 = vpop.eup %735 }
 0x1e6   :  { %v630_v16 = vmul.f32 %v736_v27, %v724_v51  ;;  %v527_v51 = vmin.f32 %v523_v42, %v1161_v6  ;;  %v575_v42 = vsub.f32 %v571_v31, %v573_v24  ;;  %v570_v31 = vmax.f32 %v1122_v13, %v1161_v6 }
 0x1e8   :  { %644 = vperm.xlu0 %707, %v630_v16   ;;  %v540_v4 = vsub.f32 %v527_v51, %v538_v55  ;;  %v456_v16 = vperm.slane %v1046_v40, 6 }
 0x1ea   :  { %v457_v57 = vadd.f32 %v456_v16, %v1141_v34  ;;  %v526_v34 = vmin.f32 %v1122_v13, %v1161_v6 }
 0x1ec   :  { %v553_v2 = vpop.permute.xlu1 %552 }
 0x1f1   :  { %v280_v61 = vpop.permute.xlu0 %279 }
 0x1f2   :  { %v287_v32 = vsub.f32 %v280_v61, %v286_v38  ;;  %v542_v61 = vmax.f32 %v540_v4, 0.0 }
 0x1f4   :  { %v289_v37 = vand.u32 2147483647, %v287_v32 }
 0x1f6   :  { %v291_v39 = vadd.f32 %v289_v37, %v276_v28  ;;  %v416_v28 = vmax.f32 %v414_v59, 0.0  ;;  %v516_v37 = vmax.f32 %v514_v23, 0.0  ;;  %v577_v59 = vmul.f32 %v575_v42, %v569_v52 }
 0x1f7   :  { %v1201_v27 = vpop.f32.mrf.mxu2 }
 0x1f8   :  { %v306_v44 = vadd.f32 %v304_v41, %v291_v39  ;;  %v557_v41 = vadd.f32 %v555_v20, %v553_v2  ;;  %v544_v51 = vmul.f32 %v542_v61, %v516_v37  ;;  %v564_v2 = vmax.f32 %v1124_v25, %v1173_v35 }
 0x1f9   :  { %v1143_v7 = vpop.permute.xlu0 %419  ;;  %v198_v61 = vperm.slane %v1046_v40, 1 }
 0x1fa   :  { %v1150_v38 = vadd.f32 %v319_v15, %v306_v44  ;;  %v427_v63 = vmin.f32 %v1143_v7, %v426_v29  ;;  %v465_v15 = vmax.f32 %v1114_v18, %v1167_v43  ;;  %v1219_v44 = vpop.f32.mrf.mxu1  ;;  %v471_v26 = vmax.f32 %v1143_v7, %v426_v29 }
 0x1fb   :  { %v470_v18 = vsub.f32 %v466_v8, %v468_v33  ;;  %v559_v43 = vsub.f32 %v557_v41, %v544_v51 }
 0x1fc   :  { %v386_v49 = vmax.f32 %v1150_v38, %v1148_v46  ;;  %v469_v36 = vsub.f32 %v465_v15, %v467_v58  ;;  %v458_v58 = vadd.f32 %v456_v16, %v1158_v9 }
 0x1fd   :  { %737 = vrcp.f32 %v559_v43  ;;  %v579_v33 = vsub.f32 %v577_v59, %v559_v43 }
 0x1fe   :  { %739 = vrcp.f32 %v577_v59  ;;  %v196_v59 = vmul.f32 %v195_v10, %v1219_v44 }
 0x1ff   :  { %v189_v0 = vpop.f32.mrf.mxu2 }
 0x201   :  { %v1156_v60 = vpop.permute.xlu0 %423 }
 0x202   :  { %v472_v55 = vmax.f32 %v1156_v60, %v426_v29  ;;  %v166_v6 = vpop.f32.mrf.mxu1 }
 0x203   :  { %v738_v16 = vpop.eup %737  ;;  %v197_v41 = vmul.f32 %v195_v10, %v166_v6 }
 0x206   :  { %v640_v12 = vpop.permute.xlu2 %639 }
 0x207   :  { %647 = vst [vmem:[#allocation7 + $0x10] sm:$0xff] %v640_v12  ;;  %v428_v12 = vmin.f32 %v1156_v60, %v426_v29  ;;  %v192_v60 = vperm.slane %v1046_v40, 2  ;;  %v417_v29 = vmax.f32 %v415_v19, 0.0 }
 0x209   :  { %v431_v30 = vpop.permute.xlu0 %430  ;;  %v194_v24 = vsub.f32 %v192_v60, %v189_v0  ;;  %v193_v42 = vsub.f32 %v192_v60, %v1201_v27 }
 0x20a   :  { %v438_v5 = vmax.f32 %v431_v30, %v437_v53  ;;  %v473_v39 = vmin.f32 %v431_v30, %v437_v53  ;;  %v498_v30 = vmin.f32 %v1124_v25, %v1173_v35 }
 0x20b   :  { %v200_v37 = vmul.f32 %v198_v61, %v194_v24 }
 0x20c   :  { %v440_v21 = vsub.f32 %v427_v63, %v438_v5  ;;  %v475_v4 = vsub.f32 %v471_v26, %v473_v39  ;;  %v566_v5 = vmin.f32 %v1118_v22, %v1176_v50  ;;  %v513_v50 = vsub.f32 %v498_v30, %v511_v3  ;;  %v740_v39 = vpop.eup %739 }
 0x20d   :  { %v199_v30 = vmul.f32 %v198_v61, %v193_v42 }
 0x20e   :  { %v442_v32 = vmax.f32 %v440_v21, 0.0  ;;  %v477_v22 = vmul.f32 %v475_v4, %v469_v36  ;;  %v568_v35 = vsub.f32 %v564_v2, %v566_v5  ;;  %v515_v3 = vmax.f32 %v513_v50, 0.0  ;;  %v120_v36 = vpop.f32.mrf.mxu3 }
 0x20f   :  { %v124_v44 = vsub.f32 0.0, %v120_v36  ;;  %v601_v2 = vperm.slane %v1046_v40, 3 }
 0x210   :  { %v1222_v17 = vmul.f32 %v442_v32, %v416_v28 }
 0x211   :  { %v435_v47 = vpop.permute.xlu0 %434  ;;  %v598_v24 = vadd.f32 %v387_v48, %v124_v44 }
 0x212   :  { %v439_v56 = vmax.f32 %v435_v47, %v437_v53  ;;  %v474_v1 = vmin.f32 %v435_v47, %v437_v53  ;;  %v459_v23 = vsub.f32 %v457_v57, %v1222_v17 }
 0x214   :  { %v441_v63 = vsub.f32 %v428_v12, %v439_v56  ;;  %v476_v7 = vsub.f32 %v472_v55, %v474_v1  ;;  %741 = vrcp.f32 %v459_v23  ;;  %v563_v12 = vmul.f32 %v738_v16, %v544_v51 }
 0x215   :  { %v583_v1 = vmul.f32 %v740_v39, %v579_v33  ;;  %v479_v57 = vsub.f32 %v477_v22, %v459_v23 }
 0x216   :  { %v443_v53 = vmax.f32 %v441_v63, 0.0  ;;  %v478_v8 = vmul.f32 %v476_v7, %v470_v18  ;;  %v202_v18 = vadd.f32 %v200_v37, %v197_v41 }
 0x217   :  { %v585_v5 = vsub.f32 %v563_v12, %v583_v1 }
 0x218   :  { %v445_v21 = vmul.f32 %v443_v53, %v417_v29  ;;  %743 = vrcp.f32 %v478_v8  ;;  %v204_v60 = vsub.f32 0.0, %v202_v18  ;;  %v590_v29 = vperm.slane %v1046_v40, 5 }
 0x219   :  { %v530_v11 = vpop.permute.xlu0 %529  ;;  %745 = vrcp.f32 %v477_v22 }
 0x21a   :  { %v460_v28 = vsub.f32 %v458_v58, %v445_v21  ;;  %v537_v13 = vmax.f32 %v530_v11, %v1164_v14  ;;  %v572_v25 = vmin.f32 %v530_v11, %v1164_v14  ;;  %v742_v52 = vpop.eup %741  ;;  %v556_v14 = vadd.f32 %v555_v20, %v1154_v54 }
 0x21b   :  { %v463_v27 = vmul.f32 %v742_v52, %v1222_v17  ;;  %v206_v22 = vmul.f32 0.5, %v204_v60 }
 0x21c   :  { %747 = vrcp.f32 %v460_v28  ;;  %v539_v32 = vsub.f32 %v526_v34, %v537_v13  ;;  %v574_v9 = vsub.f32 %v570_v31, %v572_v25  ;;  %v480_v26 = vsub.f32 %v478_v8, %v460_v28 }
 0x21d   :  { %v201_v34 = vadd.f32 %v199_v30, %v196_v59  ;;  %v589_v31 = vsub.f32 0.0, %v585_v5  ;;  %v603_v6 = vmul.f32 %v601_v2, %v206_v22 }
 0x21e   :  { %v541_v15 = vmax.f32 %v539_v32, 0.0  ;;  %v576_v19 = vmul.f32 %v574_v9, %v568_v35  ;;  %v744_v47 = vpop.eup %743  ;;  %v117_v35 = vpop.f32.mrf.mxu0 }
 0x21f   :  { %v746_v56 = vpop.eup %745  ;;  %v484_v7 = vmul.f32 %v744_v47, %v480_v26  ;;  %v203_v58 = vsub.f32 0.0, %v201_v34  ;;  %v123_v33 = vsub.f32 0.0, %v117_v35 }
 0x220   :  { %v543_v55 = vmul.f32 %v541_v15, %v515_v3  ;;  %749 = vrcp.f32 %v576_v19  ;;  %v483_v54 = vmul.f32 %v746_v56, %v479_v57 }
 0x221   :  { %v205_v40 = vmul.f32 0.5, %v203_v58  ;;  %v597_v39 = vadd.f32 %v386_v49, %v123_v33 }
 0x222   :  { %v748_v43 = vpop.eup %747  ;;  %v558_v4 = vsub.f32 %v556_v14, %v543_v55  ;;  %v485_v23 = vsub.f32 %v463_v27, %v483_v54 }
 0x223   :  { %v464_v63 = vmul.f32 %v748_v43, %v445_v21  ;;  %v602_v62 = vmul.f32 %v601_v2, %v205_v40 }
 0x224   :  { %751 = vrcp.f32 %v558_v4  ;;  %v578_v8 = vsub.f32 %v576_v19, %v558_v4  ;;  %v586_v21 = vsub.f32 0.0, %v485_v23 }
 0x225   :  { %v486_v20 = vsub.f32 %v464_v63, %v484_v7  ;;  %v634_v51 = vmin.f32 %v464_v63, %v563_v12 }
 0x226   :  { %v750_v0 = vpop.eup %749  ;;  %v591_v32 = vmul.f32 %v590_v29, %v586_v21 }
 0x227   :  { %v587_v53 = vsub.f32 0.0, %v486_v20  ;;  %636 = vst [vmem:[#allocation7 + $0x20] sm:$0xff] %v634_v51  ;;  %v582_v61 = vmul.f32 %v750_v0, %v578_v8 }
 0x229   :  { %v592_v17 = vmul.f32 %v590_v29, %v587_v53 }
 0x22a   :  { %v752_v50 = vpop.eup %751 }
 0x22b   :  { %v562_v11 = vmul.f32 %v752_v50, %v543_v55  ;;  %v594_v10 = vadd.f32 %v592_v17, %v589_v31 }
 0x22d   :  { %v584_v28 = vsub.f32 %v562_v11, %v582_v61  ;;  %v633_v13 = vmin.f32 %v463_v27, %v562_v11  ;;  %v596_v25 = vmax.f32 %v587_v53, %v594_v10 }
 0x22f   :  { %v588_v9 = vsub.f32 0.0, %v584_v28  ;;  %635 = vst [vmem:[#allocation7 + $0x8] sm:$0xff] %v633_v13  ;;  %v600_v16 = vadd.f32 %v598_v24, %v596_v25 }
 0x231   :  { %v593_v37 = vadd.f32 %v591_v32, %v588_v9  ;;  %v605_v41 = vadd.f32 %v603_v6, %v600_v16 }
 0x233   :  { %v595_v3 = vmax.f32 %v586_v21, %v593_v37  ;;  %632 = vst [vmem:[#allocation7 + $0x18] sm:$0xff] %v605_v41 }
 0x235   :  { %v599_v45 = vadd.f32 %v597_v39, %v595_v3 }
 0x237   :  { %v604_v48 = vadd.f32 %v602_v62, %v599_v45 }
 0x239   :  { %631 = vst [vmem:[#allocation7] sm:$0xff] %v604_v48 }
 0x25a   :  { %v645_v15 = vpop.permute.xlu0 %644 }
 0x25b   :  { %648 = vst [vmem:[#allocation7 + $0x28] sm:$0xff] %v645_v15 }
 0x25c   :  { %661 = dma.vmem_to_hbm [thread:$0]  %s654_s16, 768, %s656_s17, [#allocation4], %s842_s18, %s842_s18, %s843_s19  }
 0x25d   :  { %829 = dma.done.wait [#allocation4], 768  }
 0x25e   :  { %830 = vsyncadd [#allocation4], 4294966528 }
 0x25f   :  { %666 = vsyncpa [#allocation3], 1 }
 0x260   :  { %667 = vsyncpa [#allocation6], 1 }
 0x261   :  { %668 = vsyncpa [#allocation4], 1 }

</bundles_post_ra>
